<compile_context>
chip_gen: v5e
topology: v5e:2x2
jax: 0.10.0
libtpu: 0.0.40
codegen_flags: <defaults>
</compile_context>

<pallas_src>
import numpy as np
import jax
import jax.numpy as jnp
from jax import lax
from jax.experimental import pallas as pl
from jax.experimental.pallas import tpu as pltpu

HIDDEN = 7       # nn.GRU hidden_size
INPUT = 1        # nn.GRU input_size
HP = 8           # hidden padded to a sublane multiple
BP = 256         # batch lanes per grid step (2 x 128-lane columns for ILP)
GI_T_CHUNK = 256 # default time-chunk for the precomputed input-gate scratch


def _make_kernel(T, t_chunk):
    """Build the kernel for a static sequence length T and gi time-chunk."""

    def gru_fc_kernel(x_ref, wi_ref, bi_ref, wh_ref, bhn_ref, fcw_ref, fcb_ref,
                      out_ref, gi_ref):
        """One BP-lane batch chunk: full GRU recurrence + final Linear.

        Layout: batch on LANES, hidden/gates on SUBLANES (gate order [r|z|n]).
          x_ref   : (T_pad, BP)          dense time-major input (input_size==1)
          wi_ref  : (3*HP, BP)           input->gate weights, lane pre-broadcast
          bi_ref  : (3*HP, BP)           b_ih (+ b_hh already folded for r, z)
          wh_ref  : (3*HP, HP)           hidden->gate weights (gh = wh @ h)
          bhn_ref : (HP, BP)             b_hh for the n gate (stays inside r*(...))
          fcw_ref : (1, HP)              fc weight
          fcb_ref : (1, BP)              fc bias, lane pre-broadcast
          out_ref : (1, BP)              fc(out[:, -1, :]) for this batch chunk
          gi_ref  : (t_chunk, 3*HP, BP)  VMEM scratch: input-gate terms
        """
        H = HP
        # Loop-invariant loads hoisted once.
        wh = wh_ref[...]          # (24, 8)
        wi = wi_ref[...]          # (24, BP)
        bi = bi_ref[...]          # (24, BP)
        bhn = bhn_ref[...]        # (8, BP)

        def step(t, h):                                               # h: (HP, BP)
            gi = gi_ref[t]                                            # (24, BP)
            gh = jnp.dot(wh, h, preferred_element_type=jnp.float32)   # (24, BP)
            # sigmoid(x) == 0.5*tanh(0.5*x)+0.5: single EUP push, shared over
            # the aligned [r|z] sublane block.
            rz = 0.5 * jnp.tanh(0.5 * (gi[:2 * H, :] + gh[:2 * H, :])) + 0.5
            r = rz[:H, :]
            z = rz[H:, :]
            n = jnp.tanh(gi[2 * H:, :] + r * (gh[2 * H:, :] + bhn))   # (HP, BP)
            return n + z * (h - n)                                    # == (1-z)*n + z*h

        h = jnp.zeros((H, BP), jnp.float32)
        # Static Python loop over time chunks caps the gi scratch at
        # (t_chunk, 24, BP) regardless of T (mandatory on v7x's 64 MiB VMEM).
        # TODO(synk): double-buffer gi chunks to overlap the bulk gi pass with
        # the recurrence for very long T.
        for t0 in range(0, T, t_chunk):
            steps = min(t_chunk, T - t0)
            # Bulk, off-critical-path VPU pass: input-gate terms for this chunk.
            xc = x_ref[pl.ds(t0, t_chunk), :]                         # (t_chunk, BP)
            gi_ref[...] = xc[:, None, :] * wi[None, :, :] + bi[None, :, :]
            # Partial unroll (<= 8) keeps cross-step visibility without blowing
            # the 64-vreg file now that BP spans 2 lane columns.
            h = lax.fori_loop(0, steps, step, h, unroll=min(8, steps))

        # Final Linear(7 -> 1) on the last hidden state (lane-dense store).
        out_ref[...] = (jnp.dot(fcw_ref[...], h,
                                preferred_element_type=jnp.float32)
                        + fcb_ref[...])                               # (1, BP)

    return gru_fc_kernel


def init_params(key):
    """Deterministic params matching PyTorch nn.GRU / nn.Linear shapes & init."""
    k = 1.0 / np.sqrt(HIDDEN)
    ks = jax.random.split(key, 6)
    w_ih = jax.random.uniform(ks[0], (3 * HIDDEN, INPUT), jnp.float32, -k, k)
    w_hh = jax.random.uniform(ks[1], (3 * HIDDEN, HIDDEN), jnp.float32, -k, k)
    b_ih = jax.random.uniform(ks[2], (3 * HIDDEN,), jnp.float32, -k, k)
    b_hh = jax.random.uniform(ks[3], (3 * HIDDEN,), jnp.float32, -k, k)
    fc_w = jax.random.uniform(ks[4], (1, HIDDEN), jnp.float32, -k, k)
    fc_b = jax.random.uniform(ks[5], (1,), jnp.float32, -k, k)
    raw = dict(w_ih=w_ih, w_hh=w_hh, b_ih=b_ih, b_hh=b_hh, fc_w=fc_w, fc_b=fc_b)

    # Pack into the kernel layout: gates [r|z|n] on sublanes, hidden padded
    # 7 -> HP=8, and lane-PRE-BROADCAST to BP so no broadcast work remains in
    # the kernel.  b_hh for r,z folded into bi; b_hh for n kept separate.
    w_ih_n, w_hh_n = np.asarray(w_ih), np.asarray(w_hh)
    b_ih_n, b_hh_n = np.asarray(b_ih), np.asarray(b_hh)
    wi = np.zeros((3 * HP, BP), np.float32)
    bi = np.zeros((3 * HP, BP), np.float32)
    wh = np.zeros((3 * HP, HP), np.float32)
    bhn = np.zeros((HP, BP), np.float32)
    for g in range(3):
        sl_t = slice(g * HIDDEN, (g + 1) * HIDDEN)   # torch gate block
        sl_p = slice(g * HP, g * HP + HIDDEN)        # padded gate block
        wi[sl_p, :] = w_ih_n[sl_t, 0:1]              # lane broadcast
        wh[sl_p, :HIDDEN] = w_hh_n[sl_t, :]
        bias = b_ih_n[sl_t].copy()
        if g < 2:                                    # fold b_hh into r and z only
            bias += b_hh_n[sl_t]
        bi[sl_p, :] = bias[:, None]
    bhn[:HIDDEN, :] = b_hh_n[2 * HIDDEN:][:, None]
    fcw = np.zeros((1, HP), np.float32)
    fcw[0, :HIDDEN] = np.asarray(fc_w)[0]
    fcb = np.full((1, BP), float(np.asarray(fc_b)[0]), np.float32)
    packed = dict(wi=jnp.asarray(wi), bi=jnp.asarray(bi), wh=jnp.asarray(wh),
                  bhn=jnp.asarray(bhn), fcw=jnp.asarray(fcw),
                  fcb=jnp.asarray(fcb))
    return raw, packed


def gru_forward(x, packed, *, t_chunk=GI_T_CHUNK):
    """x: (B, T, 1) float32 (batch_first, like PyTorch). Returns (B, 1)."""
    B, T, _ = x.shape
    nb = pl.cdiv(B, BP)                       # batch chunks of BP lanes
    b_pad = nb * BP
    t_chunk = min(t_chunk, T)
    if T >= 8:                                # keep chunk slices sublane-aligned
        t_chunk = max(8, (t_chunk // 8) * 8)
    n_chunks = pl.cdiv(T, t_chunk)
    T_pad = n_chunks * t_chunk

    # Dense, per-chunk-contiguous input layout: (nb, T_pad, BP) — time on
    # sublanes (8 steps / vreg), batch on lanes, one contiguous DMA per chunk.
    xt = jnp.transpose(x[..., 0].astype(jnp.float32), (1, 0))            # (T, B)
    xp = jnp.zeros((T_pad, b_pad), jnp.float32).at[:T, :B].set(xt)
    x_blk = jnp.transpose(xp.reshape(T_pad, nb, BP), (1, 0, 2))          # (nb, T_pad, BP)

    # Explicit VMEM budget: x (double-buffered) + gi chunk + params + out.
    vmem_need = 4 * (2 * T_pad * BP
                     + t_chunk * 3 * HP * BP
                     + 4 * (3 * HP * BP)
                     + 8 * BP)
    vmem_limit = int(min(max(2 * vmem_need, 32 << 20), 48 << 20))

    kernel = _make_kernel(T, t_chunk)
    out_pad = pl.pallas_call(
        kernel,
        out_shape=jax.ShapeDtypeStruct((1, b_pad), jnp.float32),
        grid_spec=pltpu.PrefetchScalarGridSpec(
            num_scalar_prefetch=0,
            grid=(nb,),                       # independent BP-sequence chunks
            in_specs=[
                pl.BlockSpec((None, T_pad, BP), lambda b: (b, 0, 0)),
                pl.BlockSpec((3 * HP, BP), lambda b: (0, 0)),
                pl.BlockSpec((3 * HP, BP), lambda b: (0, 0)),
                pl.BlockSpec((3 * HP, HP), lambda b: (0, 0)),
                pl.BlockSpec((HP, BP), lambda b: (0, 0)),
                pl.BlockSpec((1, HP), lambda b: (0, 0)),
                pl.BlockSpec((1, BP), lambda b: (0, 0)),
            ],
            out_specs=pl.BlockSpec((1, BP), lambda b: (0, b)),
            scratch_shapes=[pltpu.VMEM((t_chunk, 3 * HP, BP), jnp.float32)],
        ),
        # TODO(synk): on v7x, switch this axis to pltpu.CORE_PARALLEL so both
        # TensorCores take batch chunks (only matters when B >= 2*BP).
        compiler_params=pltpu.CompilerParams(
            dimension_semantics=("parallel",),
            vmem_limit_bytes=vmem_limit),
    )(x_blk, packed["wi"], packed["bi"], packed["wh"], packed["bhn"],
      packed["fcw"], packed["fcb"])
    return out_pad[0, :B].reshape(B, 1)


def gru_reference(x, raw):
    """Pure-JAX reference matching PyTorch GRU+Linear semantics."""
    B, T, _ = x.shape
    H = HIDDEN
    w_ih, w_hh = raw["w_ih"], raw["w_hh"]
    b_ih, b_hh = raw["b_ih"], raw["b_hh"]
    h = jnp.zeros((B, H), jnp.float32)
    for t in range(T):
        x_t = x[:, t, :]
        gi = x_t @ w_ih.T + b_ih
        gh = h @ w_hh.T + b_hh
        r = jax.nn.sigmoid(gi[:, :H] + gh[:, :H])
        z = jax.nn.sigmoid(gi[:, H:2 * H] + gh[:, H:2 * H])
        n = jnp.tanh(gi[:, 2 * H:] + r * gh[:, 2 * H:])
        h = (1.0 - z) * n + z * h
    return h @ raw["fc_w"].T + raw["fc_b"]


if __name__ == "__main__":
    key = jax.random.PRNGKey(0)
    k_param, k_x = jax.random.split(key)
    k_x1, k_x2 = jax.random.split(k_x)

    raw, packed = init_params(k_param)

    # Primary small test (matches the module usage: batch_first (B, T, 1)).
    B, T = 2, 8
    x = jax.random.normal(k_x1, (B, T, INPUT), jnp.float32)
    out = jax.block_until_ready(gru_forward(x, packed))
    ref = gru_reference(x, raw)
    assert out.shape == (B, 1), out.shape
    assert np.allclose(np.asarray(out), np.asarray(ref), atol=1e-3, rtol=1e-3), (
        np.asarray(out), np.asarray(ref))

    # Secondary test: exercises the time-chunked gi path with a ragged tail.
    B2, T2 = 5, 33
    x2 = jax.random.normal(k_x2, (B2, T2, INPUT), jnp.float32)
    out2 = jax.block_until_ready(gru_forward(x2, packed, t_chunk=16))
    ref2 = gru_reference(x2, raw)
    assert out2.shape == (B2, 1), out2.shape
    assert np.allclose(np.asarray(out2), np.asarray(ref2), atol=1e-3, rtol=1e-3), (
        np.asarray(out2), np.asarray(ref2))

    print("KERNEL_OK")
</pallas_src>

<mosaic_0001>
module attributes {stable_mosaic.version = 11 : i64} {
  func.func @gru_fc_kernel(%arg0: i32, %arg1: memref<1x8x256xf32, #tpu.memory_space<vmem>>, %arg2: memref<24x256xf32, #tpu.memory_space<vmem>>, %arg3: memref<24x256xf32, #tpu.memory_space<vmem>>, %arg4: memref<24x8xf32, #tpu.memory_space<vmem>>, %arg5: memref<8x256xf32, #tpu.memory_space<vmem>>, %arg6: memref<1x8xf32, #tpu.memory_space<vmem>>, %arg7: memref<1x256xf32, #tpu.memory_space<vmem>>, %arg8: memref<1x256xf32, #tpu.memory_space<vmem>>, %arg9: memref<8x24x256xf32, #tpu.memory_space<vmem>>) attributes {dimension_semantics = [#tpu.dimension_semantics<parallel>], iteration_bounds = array<i64: 1>, scalar_prefetch = 0 : i64, scratch_operands = 1 : i64, tpu.core_type = #tpu.core_type<tc>, window_params = [{transform_indices = @transform_0, window_bounds = array<i64: 1, 8, 256>}, {pipeline_mode = #tpu.pipeline_mode<synchronous>, transform_indices = @transform_1, window_bounds = array<i64: 24, 256>}, {pipeline_mode = #tpu.pipeline_mode<synchronous>, transform_indices = @transform_2, window_bounds = array<i64: 24, 256>}, {pipeline_mode = #tpu.pipeline_mode<synchronous>, transform_indices = @transform_3, window_bounds = array<i64: 24, 8>}, {pipeline_mode = #tpu.pipeline_mode<synchronous>, transform_indices = @transform_4, window_bounds = array<i64: 8, 256>}, {pipeline_mode = #tpu.pipeline_mode<synchronous>, transform_indices = @transform_5, window_bounds = array<i64: 1, 8>}, {pipeline_mode = #tpu.pipeline_mode<synchronous>, transform_indices = @transform_6, window_bounds = array<i64: 1, 256>}, {transform_indices = @transform_7, window_bounds = array<i64: 1, 256>}]} {
    %c0 = arith.constant 0 : index
    %c0_0 = arith.constant 0 : index
    %0 = vector.load %arg4[%c0, %c0_0] : memref<24x8xf32, #tpu.memory_space<vmem>>, vector<24x8xf32>
    %c0_1 = arith.constant 0 : index
    %c0_2 = arith.constant 0 : index
    %1 = vector.load %arg2[%c0_1, %c0_2] : memref<24x256xf32, #tpu.memory_space<vmem>>, vector<24x256xf32>
    %c0_3 = arith.constant 0 : index
    %c0_4 = arith.constant 0 : index
    %2 = vector.load %arg3[%c0_3, %c0_4] : memref<24x256xf32, #tpu.memory_space<vmem>>, vector<24x256xf32>
    %c0_5 = arith.constant 0 : index
    %c0_6 = arith.constant 0 : index
    %3 = vector.load %arg5[%c0_5, %c0_6] : memref<8x256xf32, #tpu.memory_space<vmem>>, vector<8x256xf32>
    %cst = arith.constant 0.000000e+00 : f32
    %4 = vector.broadcast %cst : f32 to vector<8x256xf32>
    %c0_7 = arith.constant 0 : index
    %c0_8 = arith.constant 0 : index
    %c0_9 = arith.constant 0 : index
    %5 = vector.load %arg1[%c0_7, %c0_8, %c0_9] : memref<1x8x256xf32, #tpu.memory_space<vmem>>, vector<1x8x256xf32>
    %6 = vector.shape_cast %5 : vector<1x8x256xf32> to vector<8x256xf32>
    %7 = vector.shape_cast %6 : vector<8x256xf32> to vector<8x1x256xf32>
    %8 = vector.shape_cast %1 : vector<24x256xf32> to vector<1x24x256xf32>
    %9 = vector.broadcast %7 : vector<8x1x256xf32> to vector<8x24x256xf32>
    %10 = vector.broadcast %8 : vector<1x24x256xf32> to vector<8x24x256xf32>
    %11 = arith.mulf %9, %10 : vector<8x24x256xf32>
    %12 = vector.shape_cast %2 : vector<24x256xf32> to vector<1x24x256xf32>
    %13 = vector.broadcast %12 : vector<1x24x256xf32> to vector<8x24x256xf32>
    %14 = arith.addf %11, %13 : vector<8x24x256xf32>
    %c0_10 = arith.constant 0 : index
    %c0_11 = arith.constant 0 : index
    %c0_12 = arith.constant 0 : index
    %15 = vector.load %arg9[%c0_10, %c0_11, %c0_12] : memref<8x24x256xf32, #tpu.memory_space<vmem>>, vector<8x24x256xf32>
    tpu.vector_store %arg9[%c0_10, %c0_11, %c0_12], %14 {strides = array<i32>} : memref<8x24x256xf32, #tpu.memory_space<vmem>>, vector<8x24x256xf32>,
    %c0_i32 = arith.constant 0 : i32
    %16 = arith.index_cast %c0_i32 : i32 to index
    %c0_13 = arith.constant 0 : index
    %c0_14 = arith.constant 0 : index
    %17 = vector.load %arg9[%16, %c0_13, %c0_14] : memref<8x24x256xf32, #tpu.memory_space<vmem>>, vector<1x24x256xf32>
    %18 = vector.shape_cast %17 : vector<1x24x256xf32> to vector<24x256xf32>
    %cst_15 = arith.constant dense<0.000000e+00> : vector<24x256xf32>
    %19 = tpu.matmul %0, %4, %cst_15 {dimension_numbers = #tpu.dot_dimension_numbers<[1], [0], [0], [1], [0, 0, 1, 1], [], []>} : vector<24x8xf32>, vector<8x256xf32>, vector<24x256xf32> -> vector<24x256xf32>
    %20 = vector.extract_strided_slice %18 {offsets = [0, 0], sizes = [16, 256], strides = [1, 1]} : vector<24x256xf32> to vector<16x256xf32>
    %21 = vector.extract_strided_slice %19 {offsets = [0, 0], sizes = [16, 256], strides = [1, 1]} : vector<24x256xf32> to vector<16x256xf32>
    %22 = arith.addf %20, %21 : vector<16x256xf32>
    %cst_16 = arith.constant 5.000000e-01 : f32
    %23 = vector.broadcast %cst_16 : f32 to vector<16x256xf32>
    %24 = arith.mulf %23, %22 : vector<16x256xf32>
    %25 = math.tanh %24 : vector<16x256xf32>
    %cst_17 = arith.constant 5.000000e-01 : f32
    %26 = vector.broadcast %cst_17 : f32 to vector<16x256xf32>
    %27 = arith.mulf %26, %25 : vector<16x256xf32>
    %cst_18 = arith.constant 5.000000e-01 : f32
    %28 = vector.broadcast %cst_18 : f32 to vector<16x256xf32>
    %29 = arith.addf %27, %28 : vector<16x256xf32>
    %30 = vector.extract_strided_slice %29 {offsets = [0, 0], sizes = [8, 256], strides = [1, 1]} : vector<16x256xf32> to vector<8x256xf32>
    %31 = vector.extract_strided_slice %29 {offsets = [8, 0], sizes = [8, 256], strides = [1, 1]} : vector<16x256xf32> to vector<8x256xf32>
    %32 = vector.extract_strided_slice %18 {offsets = [16, 0], sizes = [8, 256], strides = [1, 1]} : vector<24x256xf32> to vector<8x256xf32>
    %33 = vector.extract_strided_slice %19 {offsets = [16, 0], sizes = [8, 256], strides = [1, 1]} : vector<24x256xf32> to vector<8x256xf32>
    %34 = arith.addf %33, %3 : vector<8x256xf32>
    %35 = arith.mulf %30, %34 : vector<8x256xf32>
    %36 = arith.addf %32, %35 : vector<8x256xf32>
    %37 = math.tanh %36 : vector<8x256xf32>
    %38 = arith.subf %4, %37 : vector<8x256xf32>
    %39 = arith.mulf %31, %38 : vector<8x256xf32>
    %40 = arith.addf %37, %39 : vector<8x256xf32>
    %c1_i32 = arith.constant 1 : i32
    %41 = arith.index_cast %c1_i32 : i32 to index
    %c0_19 = arith.constant 0 : index
    %c0_20 = arith.constant 0 : index
    %42 = vector.load %arg9[%41, %c0_19, %c0_20] : memref<8x24x256xf32, #tpu.memory_space<vmem>>, vector<1x24x256xf32>
    %43 = vector.shape_cast %42 : vector<1x24x256xf32> to vector<24x256xf32>
    %cst_21 = arith.constant dense<0.000000e+00> : vector<24x256xf32>
    %44 = tpu.matmul %0, %40, %cst_21 {dimension_numbers = #tpu.dot_dimension_numbers<[1], [0], [0], [1], [0, 0, 1, 1], [], []>} : vector<24x8xf32>, vector<8x256xf32>, vector<24x256xf32> -> vector<24x256xf32>
    %45 = vector.extract_strided_slice %43 {offsets = [0, 0], sizes = [16, 256], strides = [1, 1]} : vector<24x256xf32> to vector<16x256xf32>
    %46 = vector.extract_strided_slice %44 {offsets = [0, 0], sizes = [16, 256], strides = [1, 1]} : vector<24x256xf32> to vector<16x256xf32>
    %47 = arith.addf %45, %46 : vector<16x256xf32>
    %cst_22 = arith.constant 5.000000e-01 : f32
    %48 = vector.broadcast %cst_22 : f32 to vector<16x256xf32>
    %49 = arith.mulf %48, %47 : vector<16x256xf32>
    %50 = math.tanh %49 : vector<16x256xf32>
    %cst_23 = arith.constant 5.000000e-01 : f32
    %51 = vector.broadcast %cst_23 : f32 to vector<16x256xf32>
    %52 = arith.mulf %51, %50 : vector<16x256xf32>
    %cst_24 = arith.constant 5.000000e-01 : f32
    %53 = vector.broadcast %cst_24 : f32 to vector<16x256xf32>
    %54 = arith.addf %52, %53 : vector<16x256xf32>
    %55 = vector.extract_strided_slice %54 {offsets = [0, 0], sizes = [8, 256], strides = [1, 1]} : vector<16x256xf32> to vector<8x256xf32>
    %56 = vector.extract_strided_slice %54 {offsets = [8, 0], sizes = [8, 256], strides = [1, 1]} : vector<16x256xf32> to vector<8x256xf32>
    %57 = vector.extract_strided_slice %43 {offsets = [16, 0], sizes = [8, 256], strides = [1, 1]} : vector<24x256xf32> to vector<8x256xf32>
    %58 = vector.extract_strided_slice %44 {offsets = [16, 0], sizes = [8, 256], strides = [1, 1]} : vector<24x256xf32> to vector<8x256xf32>
    %59 = arith.addf %58, %3 : vector<8x256xf32>
    %60 = arith.mulf %55, %59 : vector<8x256xf32>
    %61 = arith.addf %57, %60 : vector<8x256xf32>
    %62 = math.tanh %61 : vector<8x256xf32>
    %63 = arith.subf %40, %62 : vector<8x256xf32>
    %64 = arith.mulf %56, %63 : vector<8x256xf32>
    %65 = arith.addf %62, %64 : vector<8x256xf32>
    %c2_i32 = arith.constant 2 : i32
    %66 = arith.index_cast %c2_i32 : i32 to index
    %c0_25 = arith.constant 0 : index
    %c0_26 = arith.constant 0 : index
    %67 = vector.load %arg9[%66, %c0_25, %c0_26] : memref<8x24x256xf32, #tpu.memory_space<vmem>>, vector<1x24x256xf32>
    %68 = vector.shape_cast %67 : vector<1x24x256xf32> to vector<24x256xf32>
    %cst_27 = arith.constant dense<0.000000e+00> : vector<24x256xf32>
    %69 = tpu.matmul %0, %65, %cst_27 {dimension_numbers = #tpu.dot_dimension_numbers<[1], [0], [0], [1], [0, 0, 1, 1], [], []>} : vector<24x8xf32>, vector<8x256xf32>, vector<24x256xf32> -> vector<24x256xf32>
    %70 = vector.extract_strided_slice %68 {offsets = [0, 0], sizes = [16, 256], strides = [1, 1]} : vector<24x256xf32> to vector<16x256xf32>
    %71 = vector.extract_strided_slice %69 {offsets = [0, 0], sizes = [16, 256], strides = [1, 1]} : vector<24x256xf32> to vector<16x256xf32>
    %72 = arith.addf %70, %71 : vector<16x256xf32>
    %cst_28 = arith.constant 5.000000e-01 : f32
    %73 = vector.broadcast %cst_28 : f32 to vector<16x256xf32>
    %74 = arith.mulf %73, %72 : vector<16x256xf32>
    %75 = math.tanh %74 : vector<16x256xf32>
    %cst_29 = arith.constant 5.000000e-01 : f32
    %76 = vector.broadcast %cst_29 : f32 to vector<16x256xf32>
    %77 = arith.mulf %76, %75 : vector<16x256xf32>
    %cst_30 = arith.constant 5.000000e-01 : f32
    %78 = vector.broadcast %cst_30 : f32 to vector<16x256xf32>
    %79 = arith.addf %77, %78 : vector<16x256xf32>
    %80 = vector.extract_strided_slice %79 {offsets = [0, 0], sizes = [8, 256], strides = [1, 1]} : vector<16x256xf32> to vector<8x256xf32>
    %81 = vector.extract_strided_slice %79 {offsets = [8, 0], sizes = [8, 256], strides = [1, 1]} : vector<16x256xf32> to vector<8x256xf32>
    %82 = vector.extract_strided_slice %68 {offsets = [16, 0], sizes = [8, 256], strides = [1, 1]} : vector<24x256xf32> to vector<8x256xf32>
    %83 = vector.extract_strided_slice %69 {offsets = [16, 0], sizes = [8, 256], strides = [1, 1]} : vector<24x256xf32> to vector<8x256xf32>
    %84 = arith.addf %83, %3 : vector<8x256xf32>
    %85 = arith.mulf %80, %84 : vector<8x256xf32>
    %86 = arith.addf %82, %85 : vector<8x256xf32>
    %87 = math.tanh %86 : vector<8x256xf32>
    %88 = arith.subf %65, %87 : vector<8x256xf32>
    %89 = arith.mulf %81, %88 : vector<8x256xf32>
    %90 = arith.addf %87, %89 : vector<8x256xf32>
    %c3_i32 = arith.constant 3 : i32
    %91 = arith.index_cast %c3_i32 : i32 to index
    %c0_31 = arith.constant 0 : index
    %c0_32 = arith.constant 0 : index
    %92 = vector.load %arg9[%91, %c0_31, %c0_32] : memref<8x24x256xf32, #tpu.memory_space<vmem>>, vector<1x24x256xf32>
    %93 = vector.shape_cast %92 : vector<1x24x256xf32> to vector<24x256xf32>
    %cst_33 = arith.constant dense<0.000000e+00> : vector<24x256xf32>
    %94 = tpu.matmul %0, %90, %cst_33 {dimension_numbers = #tpu.dot_dimension_numbers<[1], [0], [0], [1], [0, 0, 1, 1], [], []>} : vector<24x8xf32>, vector<8x256xf32>, vector<24x256xf32> -> vector<24x256xf32>
    %95 = vector.extract_strided_slice %93 {offsets = [0, 0], sizes = [16, 256], strides = [1, 1]} : vector<24x256xf32> to vector<16x256xf32>
    %96 = vector.extract_strided_slice %94 {offsets = [0, 0], sizes = [16, 256], strides = [1, 1]} : vector<24x256xf32> to vector<16x256xf32>
    %97 = arith.addf %95, %96 : vector<16x256xf32>
    %cst_34 = arith.constant 5.000000e-01 : f32
    %98 = vector.broadcast %cst_34 : f32 to vector<16x256xf32>
    %99 = arith.mulf %98, %97 : vector<16x256xf32>
    %100 = math.tanh %99 : vector<16x256xf32>
    %cst_35 = arith.constant 5.000000e-01 : f32
    %101 = vector.broadcast %cst_35 : f32 to vector<16x256xf32>
    %102 = arith.mulf %101, %100 : vector<16x256xf32>
    %cst_36 = arith.constant 5.000000e-01 : f32
    %103 = vector.broadcast %cst_36 : f32 to vector<16x256xf32>
    %104 = arith.addf %102, %103 : vector<16x256xf32>
    %105 = vector.extract_strided_slice %104 {offsets = [0, 0], sizes = [8, 256], strides = [1, 1]} : vector<16x256xf32> to vector<8x256xf32>
    %106 = vector.extract_strided_slice %104 {offsets = [8, 0], sizes = [8, 256], strides = [1, 1]} : vector<16x256xf32> to vector<8x256xf32>
    %107 = vector.extract_strided_slice %93 {offsets = [16, 0], sizes = [8, 256], strides = [1, 1]} : vector<24x256xf32> to vector<8x256xf32>
    %108 = vector.extract_strided_slice %94 {offsets = [16, 0], sizes = [8, 256], strides = [1, 1]} : vector<24x256xf32> to vector<8x256xf32>
    %109 = arith.addf %108, %3 : vector<8x256xf32>
    %110 = arith.mulf %105, %109 : vector<8x256xf32>
    %111 = arith.addf %107, %110 : vector<8x256xf32>
    %112 = math.tanh %111 : vector<8x256xf32>
    %113 = arith.subf %90, %112 : vector<8x256xf32>
    %114 = arith.mulf %106, %113 : vector<8x256xf32>
    %115 = arith.addf %112, %114 : vector<8x256xf32>
    %c4_i32 = arith.constant 4 : i32
    %116 = arith.index_cast %c4_i32 : i32 to index
    %c0_37 = arith.constant 0 : index
    %c0_38 = arith.constant 0 : index
    %117 = vector.load %arg9[%116, %c0_37, %c0_38] : memref<8x24x256xf32, #tpu.memory_space<vmem>>, vector<1x24x256xf32>
    %118 = vector.shape_cast %117 : vector<1x24x256xf32> to vector<24x256xf32>
    %cst_39 = arith.constant dense<0.000000e+00> : vector<24x256xf32>
    %119 = tpu.matmul %0, %115, %cst_39 {dimension_numbers = #tpu.dot_dimension_numbers<[1], [0], [0], [1], [0, 0, 1, 1], [], []>} : vector<24x8xf32>, vector<8x256xf32>, vector<24x256xf32> -> vector<24x256xf32>
    %120 = vector.extract_strided_slice %118 {offsets = [0, 0], sizes = [16, 256], strides = [1, 1]} : vector<24x256xf32> to vector<16x256xf32>
    %121 = vector.extract_strided_slice %119 {offsets = [0, 0], sizes = [16, 256], strides = [1, 1]} : vector<24x256xf32> to vector<16x256xf32>
    %122 = arith.addf %120, %121 : vector<16x256xf32>
    %cst_40 = arith.constant 5.000000e-01 : f32
    %123 = vector.broadcast %cst_40 : f32 to vector<16x256xf32>
    %124 = arith.mulf %123, %122 : vector<16x256xf32>
    %125 = math.tanh %124 : vector<16x256xf32>
    %cst_41 = arith.constant 5.000000e-01 : f32
    %126 = vector.broadcast %cst_41 : f32 to vector<16x256xf32>
    %127 = arith.mulf %126, %125 : vector<16x256xf32>
    %cst_42 = arith.constant 5.000000e-01 : f32
    %128 = vector.broadcast %cst_42 : f32 to vector<16x256xf32>
    %129 = arith.addf %127, %128 : vector<16x256xf32>
    %130 = vector.extract_strided_slice %129 {offsets = [0, 0], sizes = [8, 256], strides = [1, 1]} : vector<16x256xf32> to vector<8x256xf32>
    %131 = vector.extract_strided_slice %129 {offsets = [8, 0], sizes = [8, 256], strides = [1, 1]} : vector<16x256xf32> to vector<8x256xf32>
    %132 = vector.extract_strided_slice %118 {offsets = [16, 0], sizes = [8, 256], strides = [1, 1]} : vector<24x256xf32> to vector<8x256xf32>
    %133 = vector.extract_strided_slice %119 {offsets = [16, 0], sizes = [8, 256], strides = [1, 1]} : vector<24x256xf32> to vector<8x256xf32>
    %134 = arith.addf %133, %3 : vector<8x256xf32>
    %135 = arith.mulf %130, %134 : vector<8x256xf32>
    %136 = arith.addf %132, %135 : vector<8x256xf32>
    %137 = math.tanh %136 : vector<8x256xf32>
    %138 = arith.subf %115, %137 : vector<8x256xf32>
    %139 = arith.mulf %131, %138 : vector<8x256xf32>
    %140 = arith.addf %137, %139 : vector<8x256xf32>
    %c5_i32 = arith.constant 5 : i32
    %141 = arith.index_cast %c5_i32 : i32 to index
    %c0_43 = arith.constant 0 : index
    %c0_44 = arith.constant 0 : index
    %142 = vector.load %arg9[%141, %c0_43, %c0_44] : memref<8x24x256xf32, #tpu.memory_space<vmem>>, vector<1x24x256xf32>
    %143 = vector.shape_cast %142 : vector<1x24x256xf32> to vector<24x256xf32>
    %cst_45 = arith.constant dense<0.000000e+00> : vector<24x256xf32>
    %144 = tpu.matmul %0, %140, %cst_45 {dimension_numbers = #tpu.dot_dimension_numbers<[1], [0], [0], [1], [0, 0, 1, 1], [], []>} : vector<24x8xf32>, vector<8x256xf32>, vector<24x256xf32> -> vector<24x256xf32>
    %145 = vector.extract_strided_slice %143 {offsets = [0, 0], sizes = [16, 256], strides = [1, 1]} : vector<24x256xf32> to vector<16x256xf32>
    %146 = vector.extract_strided_slice %144 {offsets = [0, 0], sizes = [16, 256], strides = [1, 1]} : vector<24x256xf32> to vector<16x256xf32>
    %147 = arith.addf %145, %146 : vector<16x256xf32>
    %cst_46 = arith.constant 5.000000e-01 : f32
    %148 = vector.broadcast %cst_46 : f32 to vector<16x256xf32>
    %149 = arith.mulf %148, %147 : vector<16x256xf32>
    %150 = math.tanh %149 : vector<16x256xf32>
    %cst_47 = arith.constant 5.000000e-01 : f32
    %151 = vector.broadcast %cst_47 : f32 to vector<16x256xf32>
    %152 = arith.mulf %151, %150 : vector<16x256xf32>
    %cst_48 = arith.constant 5.000000e-01 : f32
    %153 = vector.broadcast %cst_48 : f32 to vector<16x256xf32>
    %154 = arith.addf %152, %153 : vector<16x256xf32>
    %155 = vector.extract_strided_slice %154 {offsets = [0, 0], sizes = [8, 256], strides = [1, 1]} : vector<16x256xf32> to vector<8x256xf32>
    %156 = vector.extract_strided_slice %154 {offsets = [8, 0], sizes = [8, 256], strides = [1, 1]} : vector<16x256xf32> to vector<8x256xf32>
    %157 = vector.extract_strided_slice %143 {offsets = [16, 0], sizes = [8, 256], strides = [1, 1]} : vector<24x256xf32> to vector<8x256xf32>
    %158 = vector.extract_strided_slice %144 {offsets = [16, 0], sizes = [8, 256], strides = [1, 1]} : vector<24x256xf32> to vector<8x256xf32>
    %159 = arith.addf %158, %3 : vector<8x256xf32>
    %160 = arith.mulf %155, %159 : vector<8x256xf32>
    %161 = arith.addf %157, %160 : vector<8x256xf32>
    %162 = math.tanh %161 : vector<8x256xf32>
    %163 = arith.subf %140, %162 : vector<8x256xf32>
    %164 = arith.mulf %156, %163 : vector<8x256xf32>
    %165 = arith.addf %162, %164 : vector<8x256xf32>
    %c6_i32 = arith.constant 6 : i32
    %166 = arith.index_cast %c6_i32 : i32 to index
    %c0_49 = arith.constant 0 : index
    %c0_50 = arith.constant 0 : index
    %167 = vector.load %arg9[%166, %c0_49, %c0_50] : memref<8x24x256xf32, #tpu.memory_space<vmem>>, vector<1x24x256xf32>
    %168 = vector.shape_cast %167 : vector<1x24x256xf32> to vector<24x256xf32>
    %cst_51 = arith.constant dense<0.000000e+00> : vector<24x256xf32>
    %169 = tpu.matmul %0, %165, %cst_51 {dimension_numbers = #tpu.dot_dimension_numbers<[1], [0], [0], [1], [0, 0, 1, 1], [], []>} : vector<24x8xf32>, vector<8x256xf32>, vector<24x256xf32> -> vector<24x256xf32>
    %170 = vector.extract_strided_slice %168 {offsets = [0, 0], sizes = [16, 256], strides = [1, 1]} : vector<24x256xf32> to vector<16x256xf32>
    %171 = vector.extract_strided_slice %169 {offsets = [0, 0], sizes = [16, 256], strides = [1, 1]} : vector<24x256xf32> to vector<16x256xf32>
    %172 = arith.addf %170, %171 : vector<16x256xf32>
    %cst_52 = arith.constant 5.000000e-01 : f32
    %173 = vector.broadcast %cst_52 : f32 to vector<16x256xf32>
    %174 = arith.mulf %173, %172 : vector<16x256xf32>
    %175 = math.tanh %174 : vector<16x256xf32>
    %cst_53 = arith.constant 5.000000e-01 : f32
    %176 = vector.broadcast %cst_53 : f32 to vector<16x256xf32>
    %177 = arith.mulf %176, %175 : vector<16x256xf32>
    %cst_54 = arith.constant 5.000000e-01 : f32
    %178 = vector.broadcast %cst_54 : f32 to vector<16x256xf32>
    %179 = arith.addf %177, %178 : vector<16x256xf32>
    %180 = vector.extract_strided_slice %179 {offsets = [0, 0], sizes = [8, 256], strides = [1, 1]} : vector<16x256xf32> to vector<8x256xf32>
    %181 = vector.extract_strided_slice %179 {offsets = [8, 0], sizes = [8, 256], strides = [1, 1]} : vector<16x256xf32> to vector<8x256xf32>
    %182 = vector.extract_strided_slice %168 {offsets = [16, 0], sizes = [8, 256], strides = [1, 1]} : vector<24x256xf32> to vector<8x256xf32>
    %183 = vector.extract_strided_slice %169 {offsets = [16, 0], sizes = [8, 256], strides = [1, 1]} : vector<24x256xf32> to vector<8x256xf32>
    %184 = arith.addf %183, %3 : vector<8x256xf32>
    %185 = arith.mulf %180, %184 : vector<8x256xf32>
    %186 = arith.addf %182, %185 : vector<8x256xf32>
    %187 = math.tanh %186 : vector<8x256xf32>
    %188 = arith.subf %165, %187 : vector<8x256xf32>
    %189 = arith.mulf %181, %188 : vector<8x256xf32>
    %190 = arith.addf %187, %189 : vector<8x256xf32>
    %c7_i32 = arith.constant 7 : i32
    %191 = arith.index_cast %c7_i32 : i32 to index
    %c0_55 = arith.constant 0 : index
    %c0_56 = arith.constant 0 : index
    %192 = vector.load %arg9[%191, %c0_55, %c0_56] : memref<8x24x256xf32, #tpu.memory_space<vmem>>, vector<1x24x256xf32>
    %193 = vector.shape_cast %192 : vector<1x24x256xf32> to vector<24x256xf32>
    %cst_57 = arith.constant dense<0.000000e+00> : vector<24x256xf32>
    %194 = tpu.matmul %0, %190, %cst_57 {dimension_numbers = #tpu.dot_dimension_numbers<[1], [0], [0], [1], [0, 0, 1, 1], [], []>} : vector<24x8xf32>, vector<8x256xf32>, vector<24x256xf32> -> vector<24x256xf32>
    %195 = vector.extract_strided_slice %193 {offsets = [0, 0], sizes = [16, 256], strides = [1, 1]} : vector<24x256xf32> to vector<16x256xf32>
    %196 = vector.extract_strided_slice %194 {offsets = [0, 0], sizes = [16, 256], strides = [1, 1]} : vector<24x256xf32> to vector<16x256xf32>
    %197 = arith.addf %195, %196 : vector<16x256xf32>
    %cst_58 = arith.constant 5.000000e-01 : f32
    %198 = vector.broadcast %cst_58 : f32 to vector<16x256xf32>
    %199 = arith.mulf %198, %197 : vector<16x256xf32>
    %200 = math.tanh %199 : vector<16x256xf32>
    %cst_59 = arith.constant 5.000000e-01 : f32
    %201 = vector.broadcast %cst_59 : f32 to vector<16x256xf32>
    %202 = arith.mulf %201, %200 : vector<16x256xf32>
    %cst_60 = arith.constant 5.000000e-01 : f32
    %203 = vector.broadcast %cst_60 : f32 to vector<16x256xf32>
    %204 = arith.addf %202, %203 : vector<16x256xf32>
    %205 = vector.extract_strided_slice %204 {offsets = [0, 0], sizes = [8, 256], strides = [1, 1]} : vector<16x256xf32> to vector<8x256xf32>
    %206 = vector.extract_strided_slice %204 {offsets = [8, 0], sizes = [8, 256], strides = [1, 1]} : vector<16x256xf32> to vector<8x256xf32>
    %207 = vector.extract_strided_slice %193 {offsets = [16, 0], sizes = [8, 256], strides = [1, 1]} : vector<24x256xf32> to vector<8x256xf32>
    %208 = vector.extract_strided_slice %194 {offsets = [16, 0], sizes = [8, 256], strides = [1, 1]} : vector<24x256xf32> to vector<8x256xf32>
    %209 = arith.addf %208, %3 : vector<8x256xf32>
    %210 = arith.mulf %205, %209 : vector<8x256xf32>
    %211 = arith.addf %207, %210 : vector<8x256xf32>
    %212 = math.tanh %211 : vector<8x256xf32>
    %213 = arith.subf %190, %212 : vector<8x256xf32>
    %214 = arith.mulf %206, %213 : vector<8x256xf32>
    %215 = arith.addf %212, %214 : vector<8x256xf32>
    %c8_i32 = arith.constant 8 : i32
    %c0_61 = arith.constant 0 : index
    %c0_62 = arith.constant 0 : index
    %216 = vector.load %arg6[%c0_61, %c0_62] : memref<1x8xf32, #tpu.memory_space<vmem>>, vector<1x8xf32>
    %cst_63 = arith.constant dense<0.000000e+00> : vector<1x256xf32>
    %217 = tpu.matmul %216, %215, %cst_63 {dimension_numbers = #tpu.dot_dimension_numbers<[1], [0], [0], [1], [0, 0, 1, 1], [], []>} : vector<1x8xf32>, vector<8x256xf32>, vector<1x256xf32> -> vector<1x256xf32>
    %c0_64 = arith.constant 0 : index
    %c0_65 = arith.constant 0 : index
    %218 = vector.load %arg7[%c0_64, %c0_65] : memref<1x256xf32, #tpu.memory_space<vmem>>, vector<1x256xf32>
    %219 = arith.addf %217, %218 : vector<1x256xf32>
    %c0_66 = arith.constant 0 : index
    %c0_67 = arith.constant 0 : index
    %220 = vector.load %arg8[%c0_66, %c0_67] : memref<1x256xf32, #tpu.memory_space<vmem>>, vector<1x256xf32>
    tpu.vector_store %arg8[%c0_66, %c0_67], %219 {strides = array<i32>} : memref<1x256xf32, #tpu.memory_space<vmem>>, vector<1x256xf32>,
    return
  }
  func.func @transform_0(%arg0: i32) -> (i32, i32, i32) {
    %c0_i32 = arith.constant 0 : i32
    %c0_i32_0 = arith.constant 0 : i32
    %c0_i32_1 = arith.constant 0 : i32
    return %arg0, %c0_i32, %c0_i32_0 : i32, i32, i32
  }
  func.func @transform_1(%arg0: i32) -> (i32, i32) {
    %c0_i32 = arith.constant 0 : i32
    %c0_i32_0 = arith.constant 0 : i32
    %c0_i32_1 = arith.constant 0 : i32
    return %c0_i32, %c0_i32_0 : i32, i32
  }
  func.func @transform_2(%arg0: i32) -> (i32, i32) {
    %c0_i32 = arith.constant 0 : i32
    %c0_i32_0 = arith.constant 0 : i32
    %c0_i32_1 = arith.constant 0 : i32
    return %c0_i32, %c0_i32_0 : i32, i32
  }
  func.func @transform_3(%arg0: i32) -> (i32, i32) {
    %c0_i32 = arith.constant 0 : i32
    %c0_i32_0 = arith.constant 0 : i32
    %c0_i32_1 = arith.constant 0 : i32
    return %c0_i32, %c0_i32_0 : i32, i32
  }
  func.func @transform_4(%arg0: i32) -> (i32, i32) {
    %c0_i32 = arith.constant 0 : i32
    %c0_i32_0 = arith.constant 0 : i32
    %c0_i32_1 = arith.constant 0 : i32
    return %c0_i32, %c0_i32_0 : i32, i32
  }
  func.func @transform_5(%arg0: i32) -> (i32, i32) {
    %c0_i32 = arith.constant 0 : i32
    %c0_i32_0 = arith.constant 0 : i32
    %c0_i32_1 = arith.constant 0 : i32
    return %c0_i32, %c0_i32_0 : i32, i32
  }
  func.func @transform_6(%arg0: i32) -> (i32, i32) {
    %c0_i32 = arith.constant 0 : i32
    %c0_i32_0 = arith.constant 0 : i32
    %c0_i32_1 = arith.constant 0 : i32
    return %c0_i32, %c0_i32_0 : i32, i32
  }
  func.func @transform_7(%arg0: i32) -> (i32, i32) {
    %c0_i32 = arith.constant 0 : i32
    %c0_i32_0 = arith.constant 0 : i32
    return %c0_i32, %arg0 : i32, i32
  }
}

</mosaic_0001>

<bundles_post_ra>
// kernel: tpu_custom_call.1
= control target key start
LH: loop header
LB: loop body
LE: loop exit
PB: predicated region body
PF: predicated region fallthrough
CT: control target
= control target key end

     0   :  { %12 = vsyncpa [#allocation4], 0  ;;  %s1710_s0 = inlined_call_operand.vmem [shape: f32[1,8,256], index: 0, kind: input, shape index: {}]   ;;  %s1711_s1 = inlined_call_operand.hbm [shape: f32[24,256], index: 1, kind: input, shape index: {}]   ;;  %s1712_s2 = inlined_call_operand.hbm [shape: f32[24,256], index: 2, kind: input, shape index: {}]   ;;  %s1713_s3 = inlined_call_operand.vmem [shape: f32[24,8], index: 3, kind: input, shape index: {}]   ;;  %s1714_s4 = inlined_call_operand.vmem [shape: f32[8,256], index: 4, kind: input, shape index: {}]   ;;  %s1715_s5 = inlined_call_operand.vmem [shape: f32[1,8], index: 5, kind: input, shape index: {}]   ;;  %s1716_s6 = inlined_call_operand.vmem [shape: f32[1,256], index: 6, kind: input, shape index: {}]   ;;  %s1717_s7 = inlined_call_operand.hbm [shape: f32[1,256], index: 7, kind: output, shape index: {}]  }
   0x1   :  { %13 = vsyncpa [#allocation7], 0 }
   0x2   :  { %14 = vsyncpa [#allocation5], 0  ;;  %s21_s26 = sshll.u32 %s1711_s1, 4  ;;  %s1315_s27 = smov [#allocation3]   ;;  %s22_s26 = int_to_ptr.hbm [resolvable:$true] %s21_s26 }
   0x3   :  { %s23_s28 = sshll.u32 %s1315_s27, 4  ;;  %s34_s8 = sshll.u32 %s1712_s2, 4  ;;  %s24_s28 = int_to_ptr.vmem [resolvable:$true] %s23_s28  ;;  %s35_s8 = int_to_ptr.hbm [resolvable:$true] %s34_s8 }
   0x4   :  { %s1316_s9 = smov 256   ;;  %s1317_s10 = smov 16  }
   0x5   :  { %29 = dma.hbm_to_vmem [thread:$0]  %s22_s26, 768, %s24_s28, [#allocation4], %s1316_s9, %s1316_s9, %s1317_s10  }
   0x6   :  { %s1318_s11 = smov [#allocation6]  }
   0x7   :  { %s36_s12 = sshll.u32 %s1318_s11, 4  ;;  %s37_s12 = int_to_ptr.vmem [resolvable:$true] %s36_s12 }
   0x8   :  { %42 = dma.hbm_to_vmem [thread:$0]  %s35_s8, 768, %s37_s12, [#allocation7], %s1316_s9, %s1316_s9, %s1317_s10  }
   0x9   :  { %1309 = dma.done.wait [#allocation4], 768  }
   0xa   :  { %1310 = vsyncadd [#allocation4], 4294966528 }
   0xb   :  { %1311 = dma.done.wait [#allocation7], 768  }
   0xc   :  { %1312 = vsyncadd [#allocation7], 4294966528  ;;  %v1319_v0 = vmov 0.0   ;;  %vm286_vm0 = vcmask 64512   ;;  %v1370_v1 = vld [vmem:[%s1713_s3] sm:$0xff]  ;;  %v1377_v2 = vld [vmem:[%s1713_s3 + $0x8] sm:$0xff] }
   0xd   :  { %311 = vmatpush.msra.mxu0 %v1319_v0  ;;  %v1384_v3 = vld [vmem:[%s1713_s3 + $0x10] sm:$0xff]  ;;  %v77_v4 = vld [vmem:[%s1710_s0 + $0x8] sm:$0xff]  ;;  %v1396_v6 = vld [vmem:[%s1710_s0] sm:$0xff]  ;;  %vm81_vm1 = vcmask 1040384   ;;  %vm83_vm2 = vcmask 1041409   ;;  %vm86_vm3 = vcmask 1042434  }
   0xe   :  { %1085 = vmatmul.msk.f32.vlgmr.msra.gmra.mxu0 %vm286_vm0, %v1370_v1  ;;  %v1391_v5 = vrot.slane %v77_v4, 7  ;;  %v1401_v10 = vld [vmem:[#allocation3] sm:$0xff]  ;;  %v1403_v11 = vld [vmem:[#allocation3 + $0x8] sm:$0xff]  ;;  %v1407_v14 = vld [vmem:[#allocation6] sm:$0xff]  ;;  %vm89_vm4 = vcmask 1043459   ;;  %vm92_vm5 = vcmask 1044484  }
   0xf   :  { %v1409_v15 = vld [vmem:[#allocation6 + $0x8] sm:$0xff]  ;;  %v1413_v18 = vld [vmem:[#allocation3 + $0x10] sm:$0xff]  ;;  %v1418_v24 = vld [vmem:[#allocation6 + $0x10] sm:$0xff]  ;;  %vm95_vm6 = vcmask 1045509   ;;  %vm98_vm7 = vcmask 1046534   ;;  %vm101_vm8 = vcmask 1046528  }
  0x10   :  { %v82_v7 = vsel %vm81_vm1, %v1396_v6, %v1391_v5  ;;  %v1415_v19 = vld [vmem:[#allocation3 + $0x18] sm:$0xff]  ;;  %v1421_v28 = vld [vmem:[#allocation6 + $0x18] sm:$0xff]  ;;  %v1425_v33 = vld [vmem:[#allocation3 + $0x20] sm:$0xff]  ;;  %s1074_s29 = sshll.u32 %s1717_s7, 4  ;;  %s1075_s29 = int_to_ptr.hbm [resolvable:$true] %s1074_s29 }
  0x11   :  { %v104_v8 = vperm.slane %v82_v7, 0  ;;  %v105_v9 = vperm.slane %v82_v7, 1  ;;  %v1427_v34 = vld [vmem:[#allocation3 + $0x28] sm:$0xff]  ;;  %v1431_v43 = vld [vmem:[#allocation6 + $0x20] sm:$0xff]  ;;  %v1433_v44 = vld [vmem:[#allocation6 + $0x28] sm:$0xff] }
  0x12   :  { %v1438_v46 = vld [vmem:[%s1714_s4] sm:$0xff]  ;;  %v1443_v47 = vld [vmem:[%s1714_s4 + $0x8] sm:$0xff] }
  0x13   :  { %v136_v12 = vmul.f32 %v104_v8, %v1401_v10  ;;  %v137_v13 = vmul.f32 %v105_v9, %v1403_v11  ;;  %v138_v23 = vmul.f32 %v104_v8, %v1413_v18  ;;  %v139_v25 = vmul.f32 %v105_v9, %v1415_v19 }
  0x14   :  { %v140_v39 = vmul.f32 %v104_v8, %v1425_v33  ;;  %v141_v40 = vmul.f32 %v105_v9, %v1427_v34 }
  0x15   :  { %v184_v16 = vadd.f32 %v136_v12, %v1407_v14  ;;  %v185_v17 = vadd.f32 %v137_v13, %v1409_v15  ;;  %v186_v29 = vadd.f32 %v138_v23, %v1418_v24  ;;  %v187_v30 = vadd.f32 %v139_v25, %v1421_v28 }
  0x16   :  { %1086 = vmatmul.msk.f32.gmra.mxu0 %vm286_vm0, %v1377_v2  ;;  %v188_v48 = vadd.f32 %v140_v39, %v1431_v43  ;;  %v189_v49 = vadd.f32 %v141_v40, %v1433_v44 }
  0x1e   :  { %1087 = vmatmul.msk.f32.gmra.mxu0 %vm286_vm0, %v1384_v3 }
  0x8b   :  { %v313_v20 = vpop.f32.mrf.mxu0 }
  0x8c   :  { %v322_v21 = vadd.f32 %v313_v20, %v184_v16  ;;  %v323_v22 = vadd.f32 %v313_v20, %v185_v17  ;;  %v84_v20 = vsel %vm83_vm2, %v1396_v6, %v1391_v5 }
  0x8e   :  { %v326_v26 = vmul.f32 0.5, %v322_v21  ;;  %v327_v27 = vmul.f32 0.5, %v323_v22  ;;  %v85_v21 = vrot.slane %v84_v20, 1 }
  0x90   :  { %1138 = vtanh.f32 %v326_v26  ;;  %v106_v22 = vperm.slane %v85_v21, 0  ;;  %v107_v25 = vperm.slane %v85_v21, 1 }
  0x91   :  { %1140 = vtanh.f32 %v327_v27 }
  0x92   :  { %v142_v23 = vmul.f32 %v106_v22, %v1401_v10  ;;  %v145_v40 = vmul.f32 %v107_v25, %v1415_v19 }
  0x93   :  { %v316_v31 = vpop.f32.mrf.mxu0 }
  0x94   :  { %v324_v32 = vadd.f32 %v316_v31, %v186_v29  ;;  %v325_v35 = vadd.f32 %v316_v31, %v187_v30  ;;  %v190_v26 = vadd.f32 %v142_v23, %v1407_v14  ;;  %v143_v29 = vmul.f32 %v107_v25, %v1403_v11 }
  0x95   :  { %v144_v31 = vmul.f32 %v106_v22, %v1413_v18 }
  0x96   :  { %v1139_v36 = vpop.eup %1138  ;;  %v328_v38 = vmul.f32 0.5, %v324_v32  ;;  %v329_v45 = vmul.f32 0.5, %v325_v35  ;;  %v191_v35 = vadd.f32 %v143_v29, %v1409_v15 }
  0x97   :  { %v1141_v37 = vpop.eup %1140  ;;  %v334_v41 = vmul.f32 0.5, %v1139_v36  ;;  %v192_v36 = vadd.f32 %v144_v31, %v1418_v24 }
  0x98   :  { %v335_v42 = vmul.f32 0.5, %v1141_v37  ;;  %1142 = vtanh.f32 %v328_v38 }
  0x99   :  { %v338_v51 = vadd.f32 0.5, %v334_v41  ;;  %1144 = vtanh.f32 %v329_v45 }
  0x9a   :  { %v339_v52 = vadd.f32 0.5, %v335_v42 }
  0x9b   :  { %v319_v50 = vpop.f32.mrf.mxu0 }
  0x9c   :  { %v342_v53 = vadd.f32 %v319_v50, %v1438_v46  ;;  %v343_v54 = vadd.f32 %v319_v50, %v1443_v47 }
  0x9e   :  { %v344_v55 = vmul.f32 %v342_v53, %v338_v51  ;;  %v345_v56 = vmul.f32 %v343_v54, %v339_v52  ;;  %v1143_v59 = vpop.eup %1142  ;;  %v146_v51 = vmul.f32 %v106_v22, %v1425_v33 }
  0x9f   :  { %v1145_v60 = vpop.eup %1144  ;;  %v336_v61 = vmul.f32 0.5, %v1143_v59 }
  0xa0   :  { %v346_v57 = vadd.f32 %v344_v55, %v188_v48  ;;  %v347_v58 = vadd.f32 %v345_v56, %v189_v49  ;;  %v337_v62 = vmul.f32 0.5, %v1145_v60  ;;  %v193_v48 = vadd.f32 %v145_v40, %v1421_v28 }
  0xa1   :  { %v340_v4 = vadd.f32 0.5, %v336_v61  ;;  %v194_v56 = vadd.f32 %v146_v51, %v1431_v43 }
  0xa2   :  { %1146 = vtanh.f32 %v346_v57  ;;  %v341_v8 = vadd.f32 0.5, %v337_v62  ;;  %v147_v62 = vmul.f32 %v107_v25, %v1427_v34 }
  0xa3   :  { %1148 = vtanh.f32 %v347_v58 }
  0xa8   :  { %v1147_v63 = vpop.eup %1146 }
  0xa9   :  { %v1149_v0 = vpop.eup %1148  ;;  %v350_v7 = vsub.f32 0.0, %v1147_v63 }
  0xaa   :  { %v351_v9 = vsub.f32 0.0, %v1149_v0 }
  0xab   :  { %v352_v12 = vmul.f32 %v350_v7, %v340_v4 }
  0xac   :  { %v353_v13 = vmul.f32 %v351_v9, %v341_v8  ;;  %v195_v8 = vadd.f32 %v147_v62, %v1433_v44 }
  0xad   :  { %v1449_v16 = vadd.f32 %v1147_v63, %v352_v12 }
  0xae   :  { %v1451_v17 = vadd.f32 %v1149_v0, %v353_v13 }
  0xaf   :  { %378 = vmatpush.msra.mxu1 %v1449_v16 }
  0xb0   :  { %404 = vmatpush.msra.mxu2 %v1451_v17  ;;  %1088 = vmatmul.msk.f32.vlgmr.msra.gmra.mxu1 %vm286_vm0, %v1370_v1 }
  0xb1   :  { %1091 = vmatmul.msk.f32.vlgmr.msra.gmra.mxu2 %vm286_vm0, %v1370_v1 }
  0xb8   :  { %1089 = vmatmul.msk.f32.gmra.mxu1 %vm286_vm0, %v1377_v2 }
  0xb9   :  { %1092 = vmatmul.msk.f32.gmra.mxu2 %vm286_vm0, %v1377_v2 }
  0xc0   :  { %1090 = vmatmul.msk.f32.gmra.mxu1 %vm286_vm0, %v1384_v3 }
  0xc1   :  { %1093 = vmatmul.msk.f32.gmra.mxu2 %vm286_vm0, %v1384_v3 }
 0x12d   :  { %v380_v27 = vpop.f32.mrf.mxu1 }
 0x12e   :  { %v415_v30 = vadd.f32 %v380_v27, %v190_v26 }
 0x130   :  { %v419_v32 = vmul.f32 0.5, %v415_v30 }
 0x132   :  { %1150 = vtanh.f32 %v419_v32 }
 0x134   :  { %v406_v37 = vpop.f32.mrf.mxu2 }
 0x135   :  { %v416_v38 = vadd.f32 %v406_v37, %v191_v35  ;;  %v383_v39 = vpop.f32.mrf.mxu1 }
 0x136   :  { %v417_v41 = vadd.f32 %v383_v39, %v192_v36 }
 0x137   :  { %v420_v42 = vmul.f32 0.5, %v416_v38 }
 0x138   :  { %v1151_v45 = vpop.eup %1150  ;;  %v421_v50 = vmul.f32 0.5, %v417_v41 }
 0x139   :  { %1152 = vtanh.f32 %v420_v42  ;;  %v427_v49 = vmul.f32 0.5, %v1151_v45 }
 0x13a   :  { %1154 = vtanh.f32 %v421_v50 }
 0x13b   :  { %v431_v55 = vadd.f32 0.5, %v427_v49 }
 0x13c   :  { %v409_v52 = vpop.f32.mrf.mxu2 }
 0x13d   :  { %v418_v53 = vadd.f32 %v409_v52, %v193_v48  ;;  %v386_v54 = vpop.f32.mrf.mxu1 }
 0x13e   :  { %v435_v57 = vadd.f32 %v386_v54, %v1438_v46 }
 0x13f   :  { %v1153_v58 = vpop.eup %1152  ;;  %v422_v61 = vmul.f32 0.5, %v418_v53 }
 0x140   :  { %v428_v59 = vmul.f32 0.5, %v1153_v58  ;;  %v437_v60 = vmul.f32 %v435_v57, %v431_v55  ;;  %v1155_v4 = vpop.eup %1154 }
 0x141   :  { %v429_v12 = vmul.f32 0.5, %v1155_v4 }
 0x142   :  { %v439_v63 = vadd.f32 %v437_v60, %v194_v56  ;;  %v432_v0 = vadd.f32 0.5, %v428_v59 }
 0x143   :  { %v433_v23 = vadd.f32 0.5, %v429_v12 }
 0x144   :  { %1156 = vtanh.f32 %v439_v63  ;;  %v412_v7 = vpop.f32.mrf.mxu2 }
 0x145   :  { %1158 = vtanh.f32 %v422_v61  ;;  %v436_v9 = vadd.f32 %v412_v7, %v1443_v47 }
 0x147   :  { %v438_v13 = vmul.f32 %v436_v9, %v432_v0 }
 0x149   :  { %v440_v20 = vadd.f32 %v438_v13, %v195_v8 }
 0x14a   :  { %v1157_v21 = vpop.eup %1156 }
 0x14b   :  { %v1159_v22 = vpop.eup %1158  ;;  %1160 = vtanh.f32 %v440_v20  ;;  %v443_v26 = vsub.f32 %v1449_v16, %v1157_v21  ;;  %v87_v16 = vsel %vm86_vm3, %v1396_v6, %v1391_v5 }
 0x14c   :  { %v430_v27 = vmul.f32 0.5, %v1159_v22 }
 0x14d   :  { %v445_v25 = vmul.f32 %v443_v26, %v433_v23 }
 0x14e   :  { %v434_v31 = vadd.f32 0.5, %v430_v27 }
 0x14f   :  { %v1484_v29 = vadd.f32 %v1157_v21, %v445_v25 }
 0x151   :  { %v1161_v30 = vpop.eup %1160  ;;  %471 = vmatpush.msra.mxu3 %v1484_v29 }
 0x152   :  { %1094 = vmatmul.msk.f32.vlgmr.msra.gmra.mxu3 %vm286_vm0, %v1370_v1  ;;  %v444_v32 = vsub.f32 %v1451_v17, %v1161_v30  ;;  %v88_v17 = vrot.slane %v87_v16, 2 }
 0x154   :  { %v446_v35 = vmul.f32 %v444_v32, %v434_v31  ;;  %v108_v37 = vperm.slane %v88_v17, 0  ;;  %v109_v38 = vperm.slane %v88_v17, 1 }
 0x156   :  { %v1490_v36 = vadd.f32 %v1161_v30, %v446_v35  ;;  %v148_v39 = vmul.f32 %v108_v37, %v1401_v10  ;;  %v149_v40 = vmul.f32 %v109_v38, %v1403_v11  ;;  %v150_v50 = vmul.f32 %v108_v37, %v1413_v18 }
 0x157   :  { %v151_v52 = vmul.f32 %v109_v38, %v1415_v19  ;;  %v152_v7 = vmul.f32 %v108_v37, %v1425_v33  ;;  %v153_v9 = vmul.f32 %v109_v38, %v1427_v34 }
 0x158   :  { %497 = vmatpush.msrb.mxu0 %v1490_v36  ;;  %v196_v41 = vadd.f32 %v148_v39, %v1407_v14  ;;  %v197_v42 = vadd.f32 %v149_v40, %v1409_v15  ;;  %v198_v55 = vadd.f32 %v150_v50, %v1418_v24 }
 0x159   :  { %1097 = vmatmul.msk.f32.vlgmr.msrb.gmra.mxu0 %vm286_vm0, %v1370_v1  ;;  %v199_v56 = vadd.f32 %v151_v52, %v1421_v28  ;;  %v200_v21 = vadd.f32 %v152_v7, %v1431_v43  ;;  %v201_v26 = vadd.f32 %v153_v9, %v1433_v44 }
 0x15a   :  { %1095 = vmatmul.msk.f32.gmra.mxu3 %vm286_vm0, %v1377_v2 }
 0x161   :  { %1098 = vmatmul.msk.f32.gmra.mxu0 %vm286_vm0, %v1377_v2 }
 0x162   :  { %1096 = vmatmul.msk.f32.gmra.mxu3 %vm286_vm0, %v1384_v3 }
 0x169   :  { %1099 = vmatmul.msk.f32.gmra.mxu0 %vm286_vm0, %v1384_v3 }
 0x1d5   :  { %v473_v45 = vpop.f32.mrf.mxu3 }
 0x1d6   :  { %v508_v48 = vadd.f32 %v473_v45, %v196_v41  ;;  %v499_v49 = vpop.f32.mrf.mxu0 }
 0x1d7   :  { %v509_v51 = vadd.f32 %v499_v49, %v197_v42 }
 0x1d8   :  { %v512_v53 = vmul.f32 0.5, %v508_v48 }
 0x1d9   :  { %v513_v54 = vmul.f32 0.5, %v509_v51 }
 0x1da   :  { %1162 = vtanh.f32 %v512_v53 }
 0x1db   :  { %1164 = vtanh.f32 %v513_v54 }
 0x1dd   :  { %v476_v57 = vpop.f32.mrf.mxu3 }
 0x1de   :  { %v510_v58 = vadd.f32 %v476_v57, %v198_v55  ;;  %v502_v59 = vpop.f32.mrf.mxu0 }
 0x1df   :  { %v511_v60 = vadd.f32 %v502_v59, %v199_v56 }
 0x1e0   :  { %v1163_v61 = vpop.eup %1162  ;;  %v514_v4 = vmul.f32 0.5, %v510_v58 }
 0x1e1   :  { %v1165_v62 = vpop.eup %1164  ;;  %v520_v63 = vmul.f32 0.5, %v1163_v61  ;;  %v515_v8 = vmul.f32 0.5, %v511_v60 }
 0x1e2   :  { %v521_v0 = vmul.f32 0.5, %v1165_v62  ;;  %1166 = vtanh.f32 %v514_v4 }
 0x1e3   :  { %v524_v20 = vadd.f32 0.5, %v520_v63  ;;  %1168 = vtanh.f32 %v515_v8 }
 0x1e4   :  { %v525_v12 = vadd.f32 0.5, %v521_v0 }
 0x1e5   :  { %v479_v13 = vpop.f32.mrf.mxu3 }
 0x1e6   :  { %v528_v22 = vadd.f32 %v479_v13, %v1438_v46  ;;  %v505_v23 = vpop.f32.mrf.mxu0 }
 0x1e7   :  { %v529_v25 = vadd.f32 %v505_v23, %v1443_v47 }
 0x1e8   :  { %v530_v27 = vmul.f32 %v528_v22, %v524_v20  ;;  %v1167_v35 = vpop.eup %1166 }
 0x1e9   :  { %v531_v30 = vmul.f32 %v529_v25, %v525_v12  ;;  %v1169_v16 = vpop.eup %1168  ;;  %v522_v17 = vmul.f32 0.5, %v1167_v35 }
 0x1ea   :  { %v532_v31 = vadd.f32 %v530_v27, %v200_v21  ;;  %v523_v37 = vmul.f32 0.5, %v1169_v16 }
 0x1eb   :  { %v533_v32 = vadd.f32 %v531_v30, %v201_v26  ;;  %v526_v40 = vadd.f32 0.5, %v522_v17 }
 0x1ec   :  { %1170 = vtanh.f32 %v532_v31  ;;  %v527_v42 = vadd.f32 0.5, %v523_v37 }
 0x1ed   :  { %1172 = vtanh.f32 %v533_v32 }
 0x1f2   :  { %v1171_v38 = vpop.eup %1170 }
 0x1f3   :  { %v1173_v39 = vpop.eup %1172  ;;  %v536_v41 = vsub.f32 %v1484_v29, %v1171_v38  ;;  %v90_v29 = vsel %vm89_vm4, %v1396_v6, %v1391_v5 }
 0x1f4   :  { %v537_v45 = vsub.f32 %v1490_v36, %v1173_v39  ;;  %v91_v36 = vrot.slane %v90_v29, 3 }
 0x1f5   :  { %v538_v48 = vmul.f32 %v536_v41, %v526_v40 }
 0x1f6   :  { %v539_v49 = vmul.f32 %v537_v45, %v527_v42  ;;  %v110_v52 = vperm.slane %v91_v36, 0  ;;  %v111_v54 = vperm.slane %v91_v36, 1 }
 0x1f7   :  { %v1521_v50 = vadd.f32 %v1171_v38, %v538_v48 }
 0x1f8   :  { %v1523_v51 = vadd.f32 %v1173_v39, %v539_v49  ;;  %v154_v53 = vmul.f32 %v110_v52, %v1401_v10  ;;  %v155_v57 = vmul.f32 %v111_v54, %v1403_v11  ;;  %v156_v59 = vmul.f32 %v110_v52, %v1413_v18 }
 0x1f9   :  { %564 = vmatpush.msrb.mxu1 %v1521_v50  ;;  %v157_v7 = vmul.f32 %v111_v54, %v1415_v19  ;;  %v158_v22 = vmul.f32 %v110_v52, %v1425_v33  ;;  %v159_v37 = vmul.f32 %v111_v54, %v1427_v34 }
 0x1fa   :  { %590 = vmatpush.msrb.mxu2 %v1523_v51  ;;  %1100 = vmatmul.msk.f32.vlgmr.msrb.gmra.mxu1 %vm286_vm0, %v1370_v1  ;;  %v202_v55 = vadd.f32 %v154_v53, %v1407_v14  ;;  %v203_v61 = vadd.f32 %v155_v57, %v1409_v15  ;;  %v204_v62 = vadd.f32 %v156_v59, %v1418_v24 }
 0x1fb   :  { %1103 = vmatmul.msk.f32.vlgmr.msrb.gmra.mxu2 %vm286_vm0, %v1370_v1  ;;  %v205_v13 = vadd.f32 %v157_v7, %v1421_v28  ;;  %v206_v30 = vadd.f32 %v158_v22, %v1431_v43  ;;  %v207_v42 = vadd.f32 %v159_v37, %v1433_v44 }
 0x202   :  { %1101 = vmatmul.msk.f32.gmra.mxu1 %vm286_vm0, %v1377_v2 }
 0x203   :  { %1104 = vmatmul.msk.f32.gmra.mxu2 %vm286_vm0, %v1377_v2 }
 0x20a   :  { %1102 = vmatmul.msk.f32.gmra.mxu1 %vm286_vm0, %v1384_v3 }
 0x20b   :  { %1105 = vmatmul.msk.f32.gmra.mxu2 %vm286_vm0, %v1384_v3 }
 0x277   :  { %v566_v56 = vpop.f32.mrf.mxu1 }
 0x278   :  { %v601_v58 = vadd.f32 %v566_v56, %v202_v55 }
 0x27a   :  { %v605_v60 = vmul.f32 0.5, %v601_v58 }
 0x27c   :  { %1174 = vtanh.f32 %v605_v60 }
 0x27e   :  { %v592_v63 = vpop.f32.mrf.mxu2 }
 0x27f   :  { %v602_v0 = vadd.f32 %v592_v63, %v203_v61  ;;  %v569_v4 = vpop.f32.mrf.mxu1 }
 0x280   :  { %v603_v8 = vadd.f32 %v569_v4, %v204_v62 }
 0x281   :  { %v606_v9 = vmul.f32 0.5, %v602_v0 }
 0x282   :  { %v1175_v12 = vpop.eup %1174  ;;  %v607_v21 = vmul.f32 0.5, %v603_v8 }
 0x283   :  { %1176 = vtanh.f32 %v606_v9  ;;  %v613_v20 = vmul.f32 0.5, %v1175_v12 }
 0x284   :  { %1178 = vtanh.f32 %v607_v21 }
 0x285   :  { %v617_v27 = vadd.f32 0.5, %v613_v20 }
 0x286   :  { %v595_v23 = vpop.f32.mrf.mxu2 }
 0x287   :  { %v604_v26 = vadd.f32 %v595_v23, %v205_v13  ;;  %v572_v25 = vpop.f32.mrf.mxu1 }
 0x288   :  { %v621_v31 = vadd.f32 %v572_v25, %v1438_v46 }
 0x289   :  { %v1177_v32 = vpop.eup %1176  ;;  %v608_v17 = vmul.f32 0.5, %v604_v26 }
 0x28a   :  { %v614_v35 = vmul.f32 0.5, %v1177_v32  ;;  %v623_v16 = vmul.f32 %v621_v31, %v617_v27  ;;  %v1179_v40 = vpop.eup %1178 }
 0x28b   :  { %v615_v48 = vmul.f32 0.5, %v1179_v40 }
 0x28c   :  { %v625_v38 = vadd.f32 %v623_v16, %v206_v30  ;;  %v618_v39 = vadd.f32 0.5, %v614_v35 }
 0x28d   :  { %v619_v53 = vadd.f32 0.5, %v615_v48 }
 0x28e   :  { %1180 = vtanh.f32 %v625_v38  ;;  %v598_v41 = vpop.f32.mrf.mxu2 }
 0x28f   :  { %1182 = vtanh.f32 %v608_v17  ;;  %v622_v45 = vadd.f32 %v598_v41, %v1443_v47 }
 0x291   :  { %v624_v49 = vmul.f32 %v622_v45, %v618_v39 }
 0x293   :  { %v626_v29 = vadd.f32 %v624_v49, %v207_v42 }
 0x294   :  { %v1181_v36 = vpop.eup %1180 }
 0x295   :  { %v1183_v52 = vpop.eup %1182  ;;  %1184 = vtanh.f32 %v626_v29  ;;  %v629_v55 = vsub.f32 %v1521_v50, %v1181_v36  ;;  %v93_v50 = vsel %vm92_vm5, %v1396_v6, %v1391_v5 }
 0x296   :  { %v616_v56 = vmul.f32 0.5, %v1183_v52 }
 0x297   :  { %v631_v54 = vmul.f32 %v629_v55, %v619_v53 }
 0x298   :  { %v620_v59 = vadd.f32 0.5, %v616_v56 }
 0x299   :  { %v1556_v57 = vadd.f32 %v1181_v36, %v631_v54 }
 0x29b   :  { %v1185_v58 = vpop.eup %1184  ;;  %657 = vmatpush.msrb.mxu3 %v1556_v57 }
 0x29c   :  { %1106 = vmatmul.msk.f32.vlgmr.msrb.gmra.mxu3 %vm286_vm0, %v1370_v1  ;;  %v630_v60 = vsub.f32 %v1523_v51, %v1185_v58  ;;  %v94_v51 = vrot.slane %v93_v50, 4 }
 0x29e   :  { %v632_v61 = vmul.f32 %v630_v60, %v620_v59  ;;  %v112_v63 = vperm.slane %v94_v51, 0  ;;  %v113_v0 = vperm.slane %v94_v51, 1 }
 0x2a0   :  { %v1562_v62 = vadd.f32 %v1185_v58, %v632_v61  ;;  %v160_v4 = vmul.f32 %v112_v63, %v1401_v10  ;;  %v161_v7 = vmul.f32 %v113_v0, %v1403_v11  ;;  %v162_v21 = vmul.f32 %v112_v63, %v1413_v18 }
 0x2a1   :  { %v163_v23 = vmul.f32 %v113_v0, %v1415_v19  ;;  %v164_v41 = vmul.f32 %v112_v63, %v1425_v33  ;;  %v165_v45 = vmul.f32 %v113_v0, %v1427_v34 }
 0x2a2   :  { %683 = vmatpush.msra.mxu0 %v1562_v62  ;;  %v208_v8 = vadd.f32 %v160_v4, %v1407_v14  ;;  %v209_v9 = vadd.f32 %v161_v7, %v1409_v15  ;;  %v210_v27 = vadd.f32 %v162_v21, %v1418_v24 }
 0x2a3   :  { %1109 = vmatmul.msk.f32.vlgmr.msra.gmra.mxu0 %vm286_vm0, %v1370_v1  ;;  %v211_v30 = vadd.f32 %v163_v23, %v1421_v28  ;;  %v212_v36 = vadd.f32 %v164_v41, %v1431_v43  ;;  %v213_v55 = vadd.f32 %v165_v45, %v1433_v44 }
 0x2a4   :  { %1107 = vmatmul.msk.f32.gmra.mxu3 %vm286_vm0, %v1377_v2 }
 0x2ab   :  { %1110 = vmatmul.msk.f32.gmra.mxu0 %vm286_vm0, %v1377_v2 }
 0x2ac   :  { %1108 = vmatmul.msk.f32.gmra.mxu3 %vm286_vm0, %v1384_v3 }
 0x2b3   :  { %1111 = vmatmul.msk.f32.gmra.mxu0 %vm286_vm0, %v1384_v3 }
 0x31f   :  { %v659_v12 = vpop.f32.mrf.mxu3 }
 0x320   :  { %v694_v13 = vadd.f32 %v659_v12, %v208_v8  ;;  %v685_v20 = vpop.f32.mrf.mxu0 }
 0x321   :  { %v695_v22 = vadd.f32 %v685_v20, %v209_v9 }
 0x322   :  { %v698_v26 = vmul.f32 0.5, %v694_v13 }
 0x323   :  { %v699_v25 = vmul.f32 0.5, %v695_v22 }
 0x324   :  { %1186 = vtanh.f32 %v698_v26 }
 0x325   :  { %1188 = vtanh.f32 %v699_v25 }
 0x327   :  { %v662_v31 = vpop.f32.mrf.mxu3 }
 0x328   :  { %v696_v32 = vadd.f32 %v662_v31, %v210_v27  ;;  %v688_v35 = vpop.f32.mrf.mxu0 }
 0x329   :  { %v697_v16 = vadd.f32 %v688_v35, %v211_v30 }
 0x32a   :  { %v1187_v17 = vpop.eup %1186  ;;  %v700_v40 = vmul.f32 0.5, %v696_v32 }
 0x32b   :  { %v1189_v37 = vpop.eup %1188  ;;  %v706_v38 = vmul.f32 0.5, %v1187_v17  ;;  %v701_v42 = vmul.f32 0.5, %v697_v16 }
 0x32c   :  { %v707_v39 = vmul.f32 0.5, %v1189_v37  ;;  %1190 = vtanh.f32 %v700_v40 }
 0x32d   :  { %v710_v29 = vadd.f32 0.5, %v706_v38  ;;  %1192 = vtanh.f32 %v701_v42 }
 0x32e   :  { %v711_v48 = vadd.f32 0.5, %v707_v39 }
 0x32f   :  { %v665_v49 = vpop.f32.mrf.mxu3 }
 0x330   :  { %v714_v52 = vadd.f32 %v665_v49, %v1438_v46  ;;  %v691_v53 = vpop.f32.mrf.mxu0 }
 0x331   :  { %v715_v54 = vadd.f32 %v691_v53, %v1443_v47 }
 0x332   :  { %v716_v56 = vmul.f32 %v714_v52, %v710_v29  ;;  %v1191_v61 = vpop.eup %1190 }
 0x333   :  { %v717_v58 = vmul.f32 %v715_v54, %v711_v48  ;;  %v1193_v50 = vpop.eup %1192  ;;  %v708_v51 = vmul.f32 0.5, %v1191_v61 }
 0x334   :  { %v718_v59 = vadd.f32 %v716_v56, %v212_v36  ;;  %v709_v63 = vmul.f32 0.5, %v1193_v50 }
 0x335   :  { %v719_v60 = vadd.f32 %v717_v58, %v213_v55  ;;  %v712_v7 = vadd.f32 0.5, %v708_v51 }
 0x336   :  { %1194 = vtanh.f32 %v718_v59  ;;  %v713_v9 = vadd.f32 0.5, %v709_v63 }
 0x337   :  { %1196 = vtanh.f32 %v719_v60 }
 0x33c   :  { %v1195_v0 = vpop.eup %1194 }
 0x33d   :  { %v1197_v4 = vpop.eup %1196  ;;  %v722_v8 = vsub.f32 %v1556_v57, %v1195_v0  ;;  %v96_v57 = vsel %vm95_vm6, %v1396_v6, %v1391_v5 }
 0x33e   :  { %v723_v12 = vsub.f32 %v1562_v62, %v1197_v4  ;;  %v97_v62 = vrot.slane %v96_v57, 5 }
 0x33f   :  { %v724_v13 = vmul.f32 %v722_v8, %v712_v7 }
 0x340   :  { %v725_v20 = vmul.f32 %v723_v12, %v713_v9  ;;  %v114_v23 = vperm.slane %v97_v62, 0  ;;  %v115_v25 = vperm.slane %v97_v62, 1 }
 0x341   :  { %v1593_v21 = vadd.f32 %v1195_v0, %v724_v13 }
 0x342   :  { %v1595_v22 = vadd.f32 %v1197_v4, %v725_v20  ;;  %v166_v26 = vmul.f32 %v114_v23, %v1401_v10  ;;  %v167_v31 = vmul.f32 %v115_v25, %v1403_v11  ;;  %v168_v35 = vmul.f32 %v114_v23, %v1413_v18 }
 0x343   :  { %750 = vmatpush.msra.mxu1 %v1593_v21  ;;  %v169_v41 = vmul.f32 %v115_v25, %v1415_v19  ;;  %v170_v52 = vmul.f32 %v114_v23, %v1425_v33  ;;  %v171_v63 = vmul.f32 %v115_v25, %v1427_v34 }
 0x344   :  { %776 = vmatpush.msra.mxu2 %v1595_v22  ;;  %1112 = vmatmul.msk.f32.vlgmr.msra.gmra.mxu1 %vm286_vm0, %v1370_v1  ;;  %v214_v27 = vadd.f32 %v166_v26, %v1407_v14  ;;  %v215_v17 = vadd.f32 %v167_v31, %v1409_v15  ;;  %v216_v37 = vadd.f32 %v168_v35, %v1418_v24 }
 0x345   :  { %1115 = vmatmul.msk.f32.vlgmr.msra.gmra.mxu2 %vm286_vm0, %v1370_v1  ;;  %v217_v49 = vadd.f32 %v169_v41, %v1421_v28  ;;  %v218_v58 = vadd.f32 %v170_v52, %v1431_v43  ;;  %v219_v9 = vadd.f32 %v171_v63, %v1433_v44 }
 0x34c   :  { %1113 = vmatmul.msk.f32.gmra.mxu1 %vm286_vm0, %v1377_v2 }
 0x34d   :  { %1116 = vmatmul.msk.f32.gmra.mxu2 %vm286_vm0, %v1377_v2 }
 0x354   :  { %1114 = vmatmul.msk.f32.gmra.mxu1 %vm286_vm0, %v1384_v3 }
 0x355   :  { %1117 = vmatmul.msk.f32.gmra.mxu2 %vm286_vm0, %v1384_v3 }
 0x3c1   :  { %v752_v30 = vpop.f32.mrf.mxu1 }
 0x3c2   :  { %v787_v32 = vadd.f32 %v752_v30, %v214_v27 }
 0x3c4   :  { %v791_v16 = vmul.f32 0.5, %v787_v32 }
 0x3c6   :  { %1198 = vtanh.f32 %v791_v16 }
 0x3c8   :  { %v778_v38 = vpop.f32.mrf.mxu2 }
 0x3c9   :  { %v788_v39 = vadd.f32 %v778_v38, %v215_v17  ;;  %v755_v40 = vpop.f32.mrf.mxu1 }
 0x3ca   :  { %v789_v42 = vadd.f32 %v755_v40, %v216_v37 }
 0x3cb   :  { %v792_v45 = vmul.f32 0.5, %v788_v39 }
 0x3cc   :  { %v1199_v48 = vpop.eup %1198  ;;  %v793_v36 = vmul.f32 0.5, %v789_v42 }
 0x3cd   :  { %1200 = vtanh.f32 %v792_v45  ;;  %v799_v29 = vmul.f32 0.5, %v1199_v48 }
 0x3ce   :  { %1202 = vtanh.f32 %v793_v36 }
 0x3cf   :  { %v803_v56 = vadd.f32 0.5, %v799_v29 }
 0x3d0   :  { %v781_v53 = vpop.f32.mrf.mxu2 }
 0x3d1   :  { %v790_v55 = vadd.f32 %v781_v53, %v217_v49  ;;  %v758_v54 = vpop.f32.mrf.mxu1 }
 0x3d2   :  { %v807_v59 = vadd.f32 %v758_v54, %v1438_v46 }
 0x3d3   :  { %v1201_v60 = vpop.eup %1200  ;;  %v794_v51 = vmul.f32 0.5, %v790_v55 }
 0x3d4   :  { %v800_v61 = vmul.f32 0.5, %v1201_v60  ;;  %v809_v50 = vmul.f32 %v807_v59, %v803_v56  ;;  %v1203_v7 = vpop.eup %1202 }
 0x3d5   :  { %v801_v13 = vmul.f32 0.5, %v1203_v7 }
 0x3d6   :  { %v811_v0 = vadd.f32 %v809_v50, %v218_v58  ;;  %v804_v4 = vadd.f32 0.5, %v800_v61 }
 0x3d7   :  { %v805_v26 = vadd.f32 0.5, %v801_v13 }
 0x3d8   :  { %1204 = vtanh.f32 %v811_v0  ;;  %v784_v8 = vpop.f32.mrf.mxu2 }
 0x3d9   :  { %1206 = vtanh.f32 %v794_v51  ;;  %v808_v12 = vadd.f32 %v784_v8, %v1443_v47 }
 0x3db   :  { %v810_v20 = vmul.f32 %v808_v12, %v804_v4 }
 0x3dd   :  { %v812_v57 = vadd.f32 %v810_v20, %v219_v9 }
 0x3de   :  { %v1205_v62 = vpop.eup %1204 }
 0x3df   :  { %v1207_v23 = vpop.eup %1206  ;;  %1208 = vtanh.f32 %v812_v57  ;;  %v815_v27 = vsub.f32 %v1593_v21, %v1205_v62  ;;  %v99_v21 = vsel %vm98_vm7, %v1396_v6, %v1391_v5 }
 0x3e0   :  { %v802_v30 = vmul.f32 0.5, %v1207_v23 }
 0x3e1   :  { %v817_v25 = vmul.f32 %v815_v27, %v805_v26 }
 0x3e2   :  { %v806_v35 = vadd.f32 0.5, %v802_v30 }
 0x3e3   :  { %v1628_v31 = vadd.f32 %v1205_v62, %v817_v25 }
 0x3e5   :  { %v1209_v32 = vpop.eup %1208  ;;  %843 = vmatpush.msra.mxu3 %v1628_v31 }
 0x3e6   :  { %1118 = vmatmul.msk.f32.vlgmr.msra.gmra.mxu3 %vm286_vm0, %v1370_v1  ;;  %v816_v16 = vsub.f32 %v1595_v22, %v1209_v32  ;;  %v100_v22 = vrot.slane %v99_v21, 6 }
 0x3e8   :  { %v818_v17 = vmul.f32 %v816_v16, %v806_v35  ;;  %v116_v38 = vperm.slane %v100_v22, 0  ;;  %v117_v39 = vperm.slane %v100_v22, 1 }
 0x3ea   :  { %v1634_v37 = vadd.f32 %v1209_v32, %v818_v17  ;;  %v172_v40 = vmul.f32 %v116_v38, %v1401_v10  ;;  %v173_v41 = vmul.f32 %v117_v39, %v1403_v11  ;;  %v174_v36 = vmul.f32 %v116_v38, %v1413_v18 }
 0x3eb   :  { %v175_v53 = vmul.f32 %v117_v39, %v1415_v19  ;;  %v176_v8 = vmul.f32 %v116_v38, %v1425_v33  ;;  %v177_v9 = vmul.f32 %v117_v39, %v1427_v34 }
 0x3ec   :  { %869 = vmatpush.msrb.mxu0 %v1634_v37  ;;  %v220_v42 = vadd.f32 %v172_v40, %v1407_v14  ;;  %v221_v45 = vadd.f32 %v173_v41, %v1409_v15  ;;  %v222_v56 = vadd.f32 %v174_v36, %v1418_v24 }
 0x3ed   :  { %1121 = vmatmul.msk.f32.vlgmr.msrb.gmra.mxu0 %vm286_vm0, %v1370_v1  ;;  %v223_v58 = vadd.f32 %v175_v53, %v1421_v28  ;;  %v224_v57 = vadd.f32 %v176_v8, %v1431_v43  ;;  %v225_v26 = vadd.f32 %v177_v9, %v1433_v44 }
 0x3ee   :  { %1119 = vmatmul.msk.f32.gmra.mxu3 %vm286_vm0, %v1377_v2 }
 0x3f5   :  { %1122 = vmatmul.msk.f32.gmra.mxu0 %vm286_vm0, %v1377_v2 }
 0x3f6   :  { %1120 = vmatmul.msk.f32.gmra.mxu3 %vm286_vm0, %v1384_v3 }
 0x3fd   :  { %1123 = vmatmul.msk.f32.gmra.mxu0 %vm286_vm0, %v1384_v3 }
 0x469   :  { %v845_v48 = vpop.f32.mrf.mxu3 }
 0x46a   :  { %v880_v49 = vadd.f32 %v845_v48, %v220_v42  ;;  %v871_v29 = vpop.f32.mrf.mxu0 }
 0x46b   :  { %v881_v52 = vadd.f32 %v871_v29, %v221_v45 }
 0x46c   :  { %v884_v55 = vmul.f32 0.5, %v880_v49 }
 0x46d   :  { %v885_v54 = vmul.f32 0.5, %v881_v52 }
 0x46e   :  { %1210 = vtanh.f32 %v884_v55 }
 0x46f   :  { %1212 = vtanh.f32 %v885_v54 }
 0x471   :  { %v848_v59 = vpop.f32.mrf.mxu3 }
 0x472   :  { %v882_v60 = vadd.f32 %v848_v59, %v222_v56  ;;  %v874_v61 = vpop.f32.mrf.mxu0 }
 0x473   :  { %v883_v50 = vadd.f32 %v874_v61, %v223_v58 }
 0x474   :  { %v1211_v51 = vpop.eup %1210  ;;  %v886_v7 = vmul.f32 0.5, %v882_v60  ;;  %v1234_v60 = vld [vmem:[#allocation3 + $0x18] sm:$0xff] }
 0x475   :  { %v1213_v63 = vpop.eup %1212  ;;  %v892_v0 = vmul.f32 0.5, %v1211_v51  ;;  %v887_v19 = vmul.f32 0.5, %v883_v50 }
 0x476   :  { %v893_v4 = vmul.f32 0.5, %v1213_v63  ;;  %1214 = vtanh.f32 %v886_v7 }
 0x477   :  { %v896_v20 = vadd.f32 0.5, %v892_v0  ;;  %1216 = vtanh.f32 %v887_v19 }
 0x478   :  { %v897_v12 = vadd.f32 0.5, %v893_v4 }
 0x479   :  { %v851_v13 = vpop.f32.mrf.mxu3 }
 0x47a   :  { %v900_v62 = vadd.f32 %v851_v13, %v1438_v46  ;;  %v877_v23 = vpop.f32.mrf.mxu0 }
 0x47b   :  { %v901_v27 = vadd.f32 %v877_v23, %v1443_v47 }
 0x47c   :  { %v902_v25 = vmul.f32 %v900_v62, %v896_v20  ;;  %v1215_v16 = vpop.eup %1214  ;;  %v1235_v20 = vld [vmem:[#allocation3 + $0x28] sm:$0xff] }
 0x47d   :  { %v903_v30 = vmul.f32 %v901_v27, %v897_v12  ;;  %v1217_v34 = vpop.eup %1216  ;;  %v894_v17 = vmul.f32 0.5, %v1215_v16 }
 0x47e   :  { %v904_v32 = vadd.f32 %v902_v25, %v224_v57  ;;  %v895_v21 = vmul.f32 0.5, %v1217_v34 }
 0x47f   :  { %v905_v35 = vadd.f32 %v903_v30, %v225_v26  ;;  %v898_v39 = vadd.f32 0.5, %v894_v17  ;;  %v1236_v26 = vld [vmem:[#allocation6 + $0x28] sm:$0xff] }
 0x480   :  { %1218 = vtanh.f32 %v904_v32  ;;  %v899_v41 = vadd.f32 0.5, %v895_v21 }
 0x481   :  { %1220 = vtanh.f32 %v905_v35 }
 0x486   :  { %v1219_v22 = vpop.eup %1218 }
 0x487   :  { %v1221_v38 = vpop.eup %1220  ;;  %v908_v40 = vsub.f32 %v1628_v31, %v1219_v22  ;;  %v102_v31 = vsel %vm101_vm8, %v1391_v5, %v1396_v6 }
 0x488   :  { %v909_v44 = vsub.f32 %v1634_v37, %v1221_v38  ;;  %v103_v37 = vrot.slane %v102_v31, 7 }
 0x489   :  { %v910_v42 = vmul.f32 %v908_v40, %v898_v39 }
 0x48a   :  { %v911_v45 = vmul.f32 %v909_v44, %v899_v41  ;;  %v118_v29 = vperm.slane %v103_v37, 0  ;;  %v119_v36 = vperm.slane %v103_v37, 1  ;;  %v1062_v37 = vlaneseq }
 0x48b   :  { %v1665_v48 = vadd.f32 %v1219_v22, %v910_v42 }
 0x48c   :  { %v1667_v49 = vadd.f32 %v1221_v38, %v911_v45  ;;  %v180_v54 = vmul.f32 %v118_v29, %v1413_v18  ;;  %v182_v18 = vmul.f32 %v118_v29, %v1425_v33  ;;  %v183_v57 = vmul.f32 %v1235_v20, %v119_v36  ;;  %v1007_v38 = vld [vmem:[%s1715_s5] sm:$0x1]  ;;  %s1320_s5 = smov [#allocation8]  }
 0x48d   :  { %936 = vmatpush.msrb.mxu1 %v1665_v48  ;;  %v1008_v45 = vld [vmem:[%s1716_s6] sm:$0x3]  ;;  %s1072_s26 = sshll.u32 %s1320_s5, 4  ;;  %vm1064_vm9 = vcmp.lt.s32.totalorder %v1062_v37, 256  ;;  %s1073_s26 = int_to_ptr.vmem [resolvable:$true] %s1072_s26 }
 0x48e   :  { %962 = vmatpush.msrb.mxu2 %v1667_v49  ;;  %1124 = vmatmul.msk.f32.vlgmr.msrb.gmra.mxu1 %vm286_vm0, %v1370_v1  ;;  %v228_v58 = vadd.f32 %v180_v54, %v1418_v24  ;;  %v230_v24 = vadd.f32 %v182_v18, %v1431_v43  ;;  %v231_v27 = vadd.f32 %v1236_v26, %v183_v57  ;;  %v1010_v31 = vperm.slane %v1008_v45, 0 }
 0x48f   :  { %1127 = vmatmul.msk.f32.vlgmr.msrb.gmra.mxu2 %vm286_vm0, %v1370_v1  ;;  %v178_v1 = vmul.f32 %v118_v29, %v1401_v10  ;;  %v181_v10 = vmul.f32 %v1234_v60, %v119_v36 }
 0x491   :  { %v226_v52 = vadd.f32 %v178_v1, %v1407_v14 }
 0x496   :  { %1125 = vmatmul.msk.f32.gmra.mxu1 %vm286_vm0, %v1377_v2 }
 0x497   :  { %1128 = vmatmul.msk.f32.gmra.mxu2 %vm286_vm0, %v1377_v2  ;;  %v179_v2 = vmul.f32 %v119_v36, %v1403_v11  ;;  %v229_v11 = vadd.f32 %v181_v10, %v1421_v28 }
 0x49e   :  { %1126 = vmatmul.msk.f32.gmra.mxu1 %vm286_vm0, %v1384_v3 }
 0x49f   :  { %1129 = vmatmul.msk.f32.gmra.mxu2 %vm286_vm0, %v1384_v3  ;;  %v227_v3 = vadd.f32 %v179_v2, %v1409_v15 }
 0x50b   :  { %v938_v53 = vpop.f32.mrf.mxu1 }
 0x50c   :  { %v973_v55 = vadd.f32 %v938_v53, %v226_v52 }
 0x50e   :  { %v977_v56 = vmul.f32 0.5, %v973_v55 }
 0x510   :  { %1222 = vtanh.f32 %v977_v56 }
 0x512   :  { %v964_v5 = vpop.f32.mrf.mxu2 }
 0x513   :  { %v974_v6 = vadd.f32 %v964_v5, %v227_v3  ;;  %v941_v59 = vpop.f32.mrf.mxu1 }
 0x514   :  { %v975_v61 = vadd.f32 %v941_v59, %v228_v58 }
 0x515   :  { %v978_v50 = vmul.f32 0.5, %v974_v6 }
 0x516   :  { %v1223_v14 = vpop.eup %1222  ;;  %v979_v63 = vmul.f32 0.5, %v975_v61 }
 0x517   :  { %1224 = vtanh.f32 %v978_v50  ;;  %v985_v51 = vmul.f32 0.5, %v1223_v14 }
 0x518   :  { %1226 = vtanh.f32 %v979_v63 }
 0x519   :  { %v989_v7 = vadd.f32 0.5, %v985_v51 }
 0x51a   :  { %v967_v0 = vpop.f32.mrf.mxu2 }
 0x51b   :  { %v976_v15 = vadd.f32 %v967_v0, %v229_v11  ;;  %v944_v4 = vpop.f32.mrf.mxu1 }
 0x51c   :  { %v993_v8 = vadd.f32 %v944_v4, %v1438_v46 }
 0x51d   :  { %v1225_v19 = vpop.eup %1224  ;;  %v980_v13 = vmul.f32 0.5, %v976_v15 }
 0x51e   :  { %v986_v9 = vmul.f32 0.5, %v1225_v19  ;;  %v995_v12 = vmul.f32 %v993_v8, %v989_v7  ;;  %v1227_v23 = vpop.eup %1226 }
 0x51f   :  { %v987_v30 = vmul.f32 0.5, %v1227_v23 }
 0x520   :  { %v997_v28 = vadd.f32 %v995_v12, %v230_v24  ;;  %v990_v62 = vadd.f32 0.5, %v986_v9 }
 0x521   :  { %v991_v16 = vadd.f32 0.5, %v987_v30 }
 0x522   :  { %1228 = vtanh.f32 %v997_v28  ;;  %v970_v33 = vpop.f32.mrf.mxu2 }
 0x523   :  { %1230 = vtanh.f32 %v980_v13  ;;  %v994_v25 = vadd.f32 %v970_v33, %v1443_v47 }
 0x525   :  { %v996_v43 = vmul.f32 %v994_v25, %v990_v62 }
 0x527   :  { %v998_v32 = vadd.f32 %v996_v43, %v231_v27 }
 0x528   :  { %v1229_v46 = vpop.eup %1228 }
 0x529   :  { %v1231_v35 = vpop.eup %1230  ;;  %1232 = vtanh.f32 %v998_v32  ;;  %v1001_v34 = vsub.f32 %v1665_v48, %v1229_v46  ;;  %v1011_v48 = vperm.slane %v1008_v45, 1 }
 0x52a   :  { %v988_v21 = vmul.f32 0.5, %v1231_v35 }
 0x52b   :  { %v1003_v17 = vmul.f32 %v1001_v34, %v991_v16 }
 0x52c   :  { %v992_v40 = vadd.f32 0.5, %v988_v21 }
 0x52d   :  { %v1005_v22 = vadd.f32 %v1229_v46, %v1003_v17 }
 0x52f   :  { %v1233_v39 = vpop.eup %1232  ;;  %1032 = vmatpush.msrb.mxu3 %v1005_v22 }
 0x530   :  { %v1002_v47 = vsub.f32 %v1667_v49, %v1233_v39  ;;  %1130 = vmatmul.msk.f32.vlgmr.msrb.gmra.mxu3 %vm286_vm0, %v1007_v38 }
 0x532   :  { %v1004_v41 = vmul.f32 %v1002_v47, %v992_v40 }
 0x534   :  { %v1006_v44 = vadd.f32 %v1233_v39, %v1004_v41 }
 0x536   :  { %1052 = vmatpush.msra.mxu3 %v1006_v44 }
 0x538   :  { %1131 = vmatmul.msk.f32.vlgmr.msra.gmra.mxu3 %vm286_vm0, %v1007_v38 }
 0x5b3   :  { %v1034_v42 = vpop.f32.mrf.mxu3 }
 0x5b4   :  { %v1035_v49 = vadd.f32 %v1034_v42, %v1010_v31 }
 0x5bb   :  { %v1054_v29 = vpop.f32.mrf.mxu3 }
 0x5bc   :  { %v1055_v1 = vadd.f32 %v1054_v29, %v1011_v48 }
 0x5be   :  { %v1059_v36 = vrot.slane %v1055_v1, 7 }
 0x5c0   :  { %v1060_v52 = vsel %vm81_vm1, %v1035_v49, %v1059_v36 }
 0x5c1   :  { %1066 = vst.msk [vmem:[#allocation8] sm:$0x3] %vm1064_vm9, %v1060_v52 }
 0x5c2   :  { %1077 = dma.vmem_to_hbm [thread:$0]  %s1073_s26, 32, %s1075_s29, [#allocation5]  }
 0x5c3   :  { %1313 = dma.done.wait [#allocation5], 32  }
 0x5c4   :  { %1314 = vsyncadd [#allocation5], 4294967264 }
 0x5c5   :  { %1082 = vsyncpa [#allocation4], 1 }
 0x5c6   :  { %1083 = vsyncpa [#allocation7], 1 }
 0x5c7   :  { %1084 = vsyncpa [#allocation5], 1 }

</bundles_post_ra>
